<compile_context>
chip_gen: v5e
topology: v5e:2x2
jax: 0.10.0
libtpu: 0.0.40
codegen_flags: <defaults>
</compile_context>

<pallas_src>
import functools

import jax
import jax.numpy as jnp
from jax import lax
from jax.experimental import pallas as pl
from jax.experimental.pallas import tpu as pltpu

# Large finite negative instead of -inf: identical softmax whenever a row has at least
# one valid entry (exp underflows to 0), and no NaN if a row is fully masked.
_MASKED_LOGIT = -1e30


# ------------------------------ fused model kernel ------------------------------

def _fused_lstm_kernel(*refs, layer_num, hidden_dim, seq_len, batch, out_dim):
    H, T, B, O = hidden_dim, seq_len, batch, out_dim

    # ---- unpack refs: inputs..., output, scratch ----
    idx = 0
    x_ref = refs[idx]; idx += 1                         # (T*B, in_dim)
    wih_refs, whh_refs, b_refs = [], [], []
    for _ in range(layer_num):
        wih_refs.append(refs[idx]); idx += 1            # (D_l, 4H)
        whh_refs.append(refs[idx]); idx += 1            # (H,   4H)
        b_refs.append(refs[idx]); idx += 1              # (1,   4H)  (= b_ih + b_hh)
    fcw_ref = refs[idx]; idx += 1                       # (H, O)
    fcb_ref = refs[idx]; idx += 1                       # (1, O)
    mask_ref = refs[idx]; idx += 1                      # (T*B, O)
    o_ref = refs[idx]; idx += 1                         # (T*B, O)
    h_sc = refs[idx]                                    # (T*B, H) hidden-sequence scratch

    for l in range(layer_num):
        # Layer input (value snapshot; the scratch may be overwritten below).
        in_2d = x_ref[...] if l == 0 else h_sc[...]     # (T*B, D_l)
        wih = wih_refs[l][...]                          # hoisted weight loads
        whh = whh_refs[l][...]
        bias = b_refs[l][...]

        # (1) Input-side gate projection for ALL timesteps: ONE 2-D MXU pass,
        #     xg[t*B:(t+1)*B] = x_l[t] @ W_ih^T + (b_ih + b_hh).  No weight broadcast.
        xg = jnp.dot(in_2d, wih, preferred_element_type=jnp.float32) + bias   # (T*B, 4H)

        # (2) Sequential recurrence: only h @ W_hh^T + elementwise cell math remain on
        #     the serial critical path.  Fully unrolled (T*L small here); for large T use
        #     a time-chunked grid with partial unroll instead.
        h = jnp.zeros((B, H), jnp.float32)
        c = jnp.zeros((B, H), jnp.float32)
        for t in range(T):
            gates = xg[t * B:(t + 1) * B, :] + jnp.dot(
                h, whh, preferred_element_type=jnp.float32)            # (B, 4H)
            # Full-width nonlinearities (one sigmoid push, one tanh push on the EUP),
            # then static lane slices.  PyTorch gate order: i, f, g, o.
            sig = jax.nn.sigmoid(gates)
            th = jnp.tanh(gates)
            i_g = sig[:, 0 * H:1 * H]
            f_g = sig[:, 1 * H:2 * H]
            g_g = th[:, 2 * H:3 * H]
            o_g = sig[:, 3 * H:4 * H]
            c = f_g * c + i_g * g_g
            h = o_g * jnp.tanh(c)
            h_sc[t * B:(t + 1) * B, :] = h

    # (3) Head, fused: ReLU -> Linear over all T*B rows (one 2-D MXU pass)
    #     -> mask -> softmax (reciprocal on the EUP), written back as a single slab.
    h_all = jnp.maximum(h_sc[...], 0.0)                                   # (T*B, H)
    logits = jnp.dot(h_all, fcw_ref[...],
                     preferred_element_type=jnp.float32) + fcb_ref[...]   # (T*B, O)
    masked = jnp.where(mask_ref[...] != 0, logits, _MASKED_LOGIT)
    m = jnp.max(masked, axis=-1, keepdims=True)
    e = jnp.exp(masked - m)
    denom = jnp.sum(e, axis=-1, keepdims=True)
    o_ref[...] = e * pl.reciprocal(denom, approx=True)


def _fused_forward(params, x, mask):
    T, B, Din = x.shape
    H = params["lstm"][0]["whh_t"].shape[0]
    O = params["fc_w_t"].shape[1]
    L = len(params["lstm"])

    kernel = functools.partial(
        _fused_lstm_kernel,
        layer_num=L, hidden_dim=H, seq_len=T, batch=B, out_dim=O)

    # Flatten (T, B, .) -> (T*B, .) in the wrapper (free) so every matmul in the kernel
    # is a plain 2-D dot — no in-kernel reshapes, no broadcast weight copies.
    inputs = [x.reshape(T * B, Din)]
    for p in params["lstm"]:
        inputs += [p["wih_t"], p["whh_t"], p["bias"]]
    inputs += [params["fc_w_t"], params["fc_b"], mask.reshape(T * B, O)]

    vmem = pl.BlockSpec(memory_space=pltpu.MemorySpace.VMEM)   # whole array, VMEM-resident
    out2d = pl.pallas_call(
        kernel,
        out_shape=jax.ShapeDtypeStruct((T * B, O), jnp.float32),
        in_specs=[vmem] * len(inputs),
        out_specs=vmem,
        scratch_shapes=[
            pltpu.VMEM((T * B, H), jnp.float32),   # single hidden-sequence buffer
        ],
    )(*inputs)
    return out2d.reshape(T, B, O)


lstm_model_forward = jax.jit(_fused_forward)


# ----------------------------------- params -----------------------------------

def init_params(key, in_dim, hidden_dim, out_dim, layer_num):
    """Deterministic init mimicking PyTorch's U(-sqrt(1/H), sqrt(1/H))."""
    k = (1.0 / hidden_dim) ** 0.5
    params = {"lstm": []}
    for layer in range(layer_num):
        d_in = in_dim if layer == 0 else hidden_dim
        key, k1, k2, k3, k4 = jax.random.split(key, 5)
        w_ih = jax.random.uniform(k1, (4 * hidden_dim, d_in), jnp.float32, -k, k)
        w_hh = jax.random.uniform(k2, (4 * hidden_dim, hidden_dim), jnp.float32, -k, k)
        b_ih = jax.random.uniform(k3, (4 * hidden_dim,), jnp.float32, -k, k)
        b_hh = jax.random.uniform(k4, (4 * hidden_dim,), jnp.float32, -k, k)
        params["lstm"].append({
            "wih_t": w_ih.T,                                   # (d_in, 4H)
            "whh_t": w_hh.T,                                   # (H, 4H)
            "bias": (b_ih + b_hh).reshape(1, 4 * hidden_dim),  # (1, 4H)
        })
    key, k5, k6 = jax.random.split(key, 3)
    w_fc = jax.random.uniform(k5, (out_dim, hidden_dim), jnp.float32, -k, k)
    b_fc = jax.random.uniform(k6, (out_dim,), jnp.float32, -k, k)
    params["fc_w_t"] = w_fc.T                   # (H, O)
    params["fc_b"] = b_fc.reshape(1, out_dim)   # (1, O)
    return params


# ------------------------------ pure-JAX reference ------------------------------

def _reference_forward(params, x, mask):
    h_seq = x
    for p in params["lstm"]:
        _, B, _ = h_seq.shape
        H = p["whh_t"].shape[0]

        def cell(carry, x_t, p=p, H=H):
            h, c = carry
            gates = x_t @ p["wih_t"] + h @ p["whh_t"] + p["bias"]
            i = jax.nn.sigmoid(gates[:, 0 * H:1 * H])
            f = jax.nn.sigmoid(gates[:, 1 * H:2 * H])
            g = jnp.tanh(gates[:, 2 * H:3 * H])
            o = jax.nn.sigmoid(gates[:, 3 * H:4 * H])
            c = f * c + i * g
            h = o * jnp.tanh(c)
            return (h, c), h

        init = (jnp.zeros((B, H), jnp.float32), jnp.zeros((B, H), jnp.float32))
        _, h_seq = lax.scan(cell, init, h_seq)
    h = jnp.maximum(h_seq, 0.0)
    logits = h @ params["fc_w_t"] + params["fc_b"]
    masked = jnp.where(mask != 0, logits, -jnp.inf)
    return jax.nn.softmax(masked, axis=-1)


# ------------------------------------- main -------------------------------------

if __name__ == "__main__":
    seq_len, batch, in_dim, hidden_dim, out_dim, layer_num = 8, 2, 4, 32, 8, 2

    key = jax.random.PRNGKey(0)
    key, kp, kx, km = jax.random.split(key, 4)

    params = init_params(kp, in_dim, hidden_dim, out_dim, layer_num)
    x = jax.random.normal(kx, (seq_len, batch, in_dim), jnp.float32)
    mask = jax.random.bernoulli(km, 0.7, (seq_len, batch, out_dim)).astype(jnp.float32)
    # Ensure at least one valid position per row so softmax is well-defined.
    mask = mask.at[..., 0].set(1.0)

    out = lstm_model_forward(params, x, mask)
    jax.block_until_ready(out)
    assert out.shape == (seq_len, batch, out_dim)

    ref = _reference_forward(params, x, mask)
    err = float(jnp.max(jnp.abs(out - ref)))
    assert err < 2e-3, f"max abs err vs reference: {err}"

    print("KERNEL_OK")
</pallas_src>

<mosaic_0001>
module attributes {stable_mosaic.version = 11 : i64} {
  func.func @_fused_lstm_kernel(%arg0: memref<16x4xf32, #tpu.memory_space<vmem>>, %arg1: memref<4x128xf32, #tpu.memory_space<vmem>>, %arg2: memref<32x128xf32, #tpu.memory_space<vmem>>, %arg3: memref<1x128xf32, #tpu.memory_space<vmem>>, %arg4: memref<32x128xf32, #tpu.memory_space<vmem>>, %arg5: memref<32x128xf32, #tpu.memory_space<vmem>>, %arg6: memref<1x128xf32, #tpu.memory_space<vmem>>, %arg7: memref<32x8xf32, #tpu.memory_space<vmem>>, %arg8: memref<1x8xf32, #tpu.memory_space<vmem>>, %arg9: memref<16x8xf32, #tpu.memory_space<vmem>>, %arg10: memref<16x8xf32, #tpu.memory_space<vmem>>, %arg11: memref<16x32xf32, #tpu.memory_space<vmem>>) attributes {dimension_semantics = [], scalar_prefetch = 0 : i64, scratch_operands = 1 : i64, tpu.core_type = #tpu.core_type<tc>} {
    %c0 = arith.constant 0 : index
    %c0_0 = arith.constant 0 : index
    %0 = vector.load %arg0[%c0, %c0_0] : memref<16x4xf32, #tpu.memory_space<vmem>>, vector<16x4xf32>
    %c0_1 = arith.constant 0 : index
    %c0_2 = arith.constant 0 : index
    %1 = vector.load %arg1[%c0_1, %c0_2] : memref<4x128xf32, #tpu.memory_space<vmem>>, vector<4x128xf32>
    %c0_3 = arith.constant 0 : index
    %c0_4 = arith.constant 0 : index
    %2 = vector.load %arg2[%c0_3, %c0_4] : memref<32x128xf32, #tpu.memory_space<vmem>>, vector<32x128xf32>
    %c0_5 = arith.constant 0 : index
    %c0_6 = arith.constant 0 : index
    %3 = vector.load %arg3[%c0_5, %c0_6] : memref<1x128xf32, #tpu.memory_space<vmem>>, vector<1x128xf32>
    %cst = arith.constant dense<0.000000e+00> : vector<16x128xf32>
    %4 = tpu.matmul %0, %1, %cst {dimension_numbers = #tpu.dot_dimension_numbers<[1], [0], [0], [1], [0, 0, 1, 1], [], []>} : vector<16x4xf32>, vector<4x128xf32>, vector<16x128xf32> -> vector<16x128xf32>
    %5 = vector.broadcast %3 : vector<1x128xf32> to vector<16x128xf32>
    %6 = arith.addf %4, %5 : vector<16x128xf32>
    %cst_7 = arith.constant 0.000000e+00 : f32
    %7 = vector.broadcast %cst_7 : f32 to vector<2x32xf32>
    %cst_8 = arith.constant 0.000000e+00 : f32
    %8 = vector.broadcast %cst_8 : f32 to vector<2x32xf32>
    %9 = vector.extract_strided_slice %6 {offsets = [0, 0], sizes = [2, 128], strides = [1, 1]} : vector<16x128xf32> to vector<2x128xf32>
    %cst_9 = arith.constant dense<0.000000e+00> : vector<2x128xf32>
    %10 = tpu.matmul %7, %2, %cst_9 {dimension_numbers = #tpu.dot_dimension_numbers<[1], [0], [0], [1], [0, 0, 1, 1], [], []>} : vector<2x32xf32>, vector<32x128xf32>, vector<2x128xf32> -> vector<2x128xf32>
    %11 = arith.addf %9, %10 : vector<2x128xf32>
    %12 = arith.negf %11 : vector<2x128xf32>
    %13 = math.exp %12 : vector<2x128xf32>
    %cst_10 = arith.constant 1.000000e+00 : f32
    %14 = vector.broadcast %cst_10 : f32 to vector<2x128xf32>
    %15 = arith.addf %14, %13 : vector<2x128xf32>
    %16 = arith.divf %14, %15 : vector<2x128xf32>
    %17 = math.tanh %11 : vector<2x128xf32>
    %18 = vector.extract_strided_slice %16 {offsets = [0, 0], sizes = [2, 32], strides = [1, 1]} : vector<2x128xf32> to vector<2x32xf32>
    %19 = vector.extract_strided_slice %16 {offsets = [0, 32], sizes = [2, 32], strides = [1, 1]} : vector<2x128xf32> to vector<2x32xf32>
    %20 = vector.extract_strided_slice %17 {offsets = [0, 64], sizes = [2, 32], strides = [1, 1]} : vector<2x128xf32> to vector<2x32xf32>
    %21 = vector.extract_strided_slice %16 {offsets = [0, 96], sizes = [2, 32], strides = [1, 1]} : vector<2x128xf32> to vector<2x32xf32>
    %22 = arith.mulf %19, %8 : vector<2x32xf32>
    %23 = arith.mulf %18, %20 : vector<2x32xf32>
    %24 = arith.addf %22, %23 : vector<2x32xf32>
    %25 = math.tanh %24 : vector<2x32xf32>
    %26 = arith.mulf %21, %25 : vector<2x32xf32>
    %c0_11 = arith.constant 0 : index
    %c0_12 = arith.constant 0 : index
    %27 = vector.load %arg11[%c0_11, %c0_12] : memref<16x32xf32, #tpu.memory_space<vmem>>, vector<2x32xf32>
    tpu.vector_store %arg11[%c0_11, %c0_12], %26 {strides = array<i32>} : memref<16x32xf32, #tpu.memory_space<vmem>>, vector<2x32xf32>,
    %28 = vector.extract_strided_slice %6 {offsets = [2, 0], sizes = [2, 128], strides = [1, 1]} : vector<16x128xf32> to vector<2x128xf32>
    %cst_13 = arith.constant dense<0.000000e+00> : vector<2x128xf32>
    %29 = tpu.matmul %26, %2, %cst_13 {dimension_numbers = #tpu.dot_dimension_numbers<[1], [0], [0], [1], [0, 0, 1, 1], [], []>} : vector<2x32xf32>, vector<32x128xf32>, vector<2x128xf32> -> vector<2x128xf32>
    %30 = arith.addf %28, %29 : vector<2x128xf32>
    %31 = arith.negf %30 : vector<2x128xf32>
    %32 = math.exp %31 : vector<2x128xf32>
    %cst_14 = arith.constant 1.000000e+00 : f32
    %33 = vector.broadcast %cst_14 : f32 to vector<2x128xf32>
    %34 = arith.addf %33, %32 : vector<2x128xf32>
    %35 = arith.divf %33, %34 : vector<2x128xf32>
    %36 = math.tanh %30 : vector<2x128xf32>
    %37 = vector.extract_strided_slice %35 {offsets = [0, 0], sizes = [2, 32], strides = [1, 1]} : vector<2x128xf32> to vector<2x32xf32>
    %38 = vector.extract_strided_slice %35 {offsets = [0, 32], sizes = [2, 32], strides = [1, 1]} : vector<2x128xf32> to vector<2x32xf32>
    %39 = vector.extract_strided_slice %36 {offsets = [0, 64], sizes = [2, 32], strides = [1, 1]} : vector<2x128xf32> to vector<2x32xf32>
    %40 = vector.extract_strided_slice %35 {offsets = [0, 96], sizes = [2, 32], strides = [1, 1]} : vector<2x128xf32> to vector<2x32xf32>
    %41 = arith.mulf %38, %24 : vector<2x32xf32>
    %42 = arith.mulf %37, %39 : vector<2x32xf32>
    %43 = arith.addf %41, %42 : vector<2x32xf32>
    %44 = math.tanh %43 : vector<2x32xf32>
    %45 = arith.mulf %40, %44 : vector<2x32xf32>
    %c2 = arith.constant 2 : index
    %c0_15 = arith.constant 0 : index
    %46 = vector.load %arg11[%c2, %c0_15] : memref<16x32xf32, #tpu.memory_space<vmem>>, vector<2x32xf32>
    tpu.vector_store %arg11[%c2, %c0_15], %45 {strides = array<i32>} : memref<16x32xf32, #tpu.memory_space<vmem>>, vector<2x32xf32>,
    %47 = vector.extract_strided_slice %6 {offsets = [4, 0], sizes = [2, 128], strides = [1, 1]} : vector<16x128xf32> to vector<2x128xf32>
    %cst_16 = arith.constant dense<0.000000e+00> : vector<2x128xf32>
    %48 = tpu.matmul %45, %2, %cst_16 {dimension_numbers = #tpu.dot_dimension_numbers<[1], [0], [0], [1], [0, 0, 1, 1], [], []>} : vector<2x32xf32>, vector<32x128xf32>, vector<2x128xf32> -> vector<2x128xf32>
    %49 = arith.addf %47, %48 : vector<2x128xf32>
    %50 = arith.negf %49 : vector<2x128xf32>
    %51 = math.exp %50 : vector<2x128xf32>
    %cst_17 = arith.constant 1.000000e+00 : f32
    %52 = vector.broadcast %cst_17 : f32 to vector<2x128xf32>
    %53 = arith.addf %52, %51 : vector<2x128xf32>
    %54 = arith.divf %52, %53 : vector<2x128xf32>
    %55 = math.tanh %49 : vector<2x128xf32>
    %56 = vector.extract_strided_slice %54 {offsets = [0, 0], sizes = [2, 32], strides = [1, 1]} : vector<2x128xf32> to vector<2x32xf32>
    %57 = vector.extract_strided_slice %54 {offsets = [0, 32], sizes = [2, 32], strides = [1, 1]} : vector<2x128xf32> to vector<2x32xf32>
    %58 = vector.extract_strided_slice %55 {offsets = [0, 64], sizes = [2, 32], strides = [1, 1]} : vector<2x128xf32> to vector<2x32xf32>
    %59 = vector.extract_strided_slice %54 {offsets = [0, 96], sizes = [2, 32], strides = [1, 1]} : vector<2x128xf32> to vector<2x32xf32>
    %60 = arith.mulf %57, %43 : vector<2x32xf32>
    %61 = arith.mulf %56, %58 : vector<2x32xf32>
    %62 = arith.addf %60, %61 : vector<2x32xf32>
    %63 = math.tanh %62 : vector<2x32xf32>
    %64 = arith.mulf %59, %63 : vector<2x32xf32>
    %c4 = arith.constant 4 : index
    %c0_18 = arith.constant 0 : index
    %65 = vector.load %arg11[%c4, %c0_18] : memref<16x32xf32, #tpu.memory_space<vmem>>, vector<2x32xf32>
    tpu.vector_store %arg11[%c4, %c0_18], %64 {strides = array<i32>} : memref<16x32xf32, #tpu.memory_space<vmem>>, vector<2x32xf32>,
    %66 = vector.extract_strided_slice %6 {offsets = [6, 0], sizes = [2, 128], strides = [1, 1]} : vector<16x128xf32> to vector<2x128xf32>
    %cst_19 = arith.constant dense<0.000000e+00> : vector<2x128xf32>
    %67 = tpu.matmul %64, %2, %cst_19 {dimension_numbers = #tpu.dot_dimension_numbers<[1], [0], [0], [1], [0, 0, 1, 1], [], []>} : vector<2x32xf32>, vector<32x128xf32>, vector<2x128xf32> -> vector<2x128xf32>
    %68 = arith.addf %66, %67 : vector<2x128xf32>
    %69 = arith.negf %68 : vector<2x128xf32>
    %70 = math.exp %69 : vector<2x128xf32>
    %cst_20 = arith.constant 1.000000e+00 : f32
    %71 = vector.broadcast %cst_20 : f32 to vector<2x128xf32>
    %72 = arith.addf %71, %70 : vector<2x128xf32>
    %73 = arith.divf %71, %72 : vector<2x128xf32>
    %74 = math.tanh %68 : vector<2x128xf32>
    %75 = vector.extract_strided_slice %73 {offsets = [0, 0], sizes = [2, 32], strides = [1, 1]} : vector<2x128xf32> to vector<2x32xf32>
    %76 = vector.extract_strided_slice %73 {offsets = [0, 32], sizes = [2, 32], strides = [1, 1]} : vector<2x128xf32> to vector<2x32xf32>
    %77 = vector.extract_strided_slice %74 {offsets = [0, 64], sizes = [2, 32], strides = [1, 1]} : vector<2x128xf32> to vector<2x32xf32>
    %78 = vector.extract_strided_slice %73 {offsets = [0, 96], sizes = [2, 32], strides = [1, 1]} : vector<2x128xf32> to vector<2x32xf32>
    %79 = arith.mulf %76, %62 : vector<2x32xf32>
    %80 = arith.mulf %75, %77 : vector<2x32xf32>
    %81 = arith.addf %79, %80 : vector<2x32xf32>
    %82 = math.tanh %81 : vector<2x32xf32>
    %83 = arith.mulf %78, %82 : vector<2x32xf32>
    %c6 = arith.constant 6 : index
    %c0_21 = arith.constant 0 : index
    %84 = vector.load %arg11[%c6, %c0_21] : memref<16x32xf32, #tpu.memory_space<vmem>>, vector<2x32xf32>
    tpu.vector_store %arg11[%c6, %c0_21], %83 {strides = array<i32>} : memref<16x32xf32, #tpu.memory_space<vmem>>, vector<2x32xf32>,
    %85 = vector.extract_strided_slice %6 {offsets = [8, 0], sizes = [2, 128], strides = [1, 1]} : vector<16x128xf32> to vector<2x128xf32>
    %cst_22 = arith.constant dense<0.000000e+00> : vector<2x128xf32>
    %86 = tpu.matmul %83, %2, %cst_22 {dimension_numbers = #tpu.dot_dimension_numbers<[1], [0], [0], [1], [0, 0, 1, 1], [], []>} : vector<2x32xf32>, vector<32x128xf32>, vector<2x128xf32> -> vector<2x128xf32>
    %87 = arith.addf %85, %86 : vector<2x128xf32>
    %88 = arith.negf %87 : vector<2x128xf32>
    %89 = math.exp %88 : vector<2x128xf32>
    %cst_23 = arith.constant 1.000000e+00 : f32
    %90 = vector.broadcast %cst_23 : f32 to vector<2x128xf32>
    %91 = arith.addf %90, %89 : vector<2x128xf32>
    %92 = arith.divf %90, %91 : vector<2x128xf32>
    %93 = math.tanh %87 : vector<2x128xf32>
    %94 = vector.extract_strided_slice %92 {offsets = [0, 0], sizes = [2, 32], strides = [1, 1]} : vector<2x128xf32> to vector<2x32xf32>
    %95 = vector.extract_strided_slice %92 {offsets = [0, 32], sizes = [2, 32], strides = [1, 1]} : vector<2x128xf32> to vector<2x32xf32>
    %96 = vector.extract_strided_slice %93 {offsets = [0, 64], sizes = [2, 32], strides = [1, 1]} : vector<2x128xf32> to vector<2x32xf32>
    %97 = vector.extract_strided_slice %92 {offsets = [0, 96], sizes = [2, 32], strides = [1, 1]} : vector<2x128xf32> to vector<2x32xf32>
    %98 = arith.mulf %95, %81 : vector<2x32xf32>
    %99 = arith.mulf %94, %96 : vector<2x32xf32>
    %100 = arith.addf %98, %99 : vector<2x32xf32>
    %101 = math.tanh %100 : vector<2x32xf32>
    %102 = arith.mulf %97, %101 : vector<2x32xf32>
    %c8 = arith.constant 8 : index
    %c0_24 = arith.constant 0 : index
    %103 = vector.load %arg11[%c8, %c0_24] : memref<16x32xf32, #tpu.memory_space<vmem>>, vector<2x32xf32>
    tpu.vector_store %arg11[%c8, %c0_24], %102 {strides = array<i32>} : memref<16x32xf32, #tpu.memory_space<vmem>>, vector<2x32xf32>,
    %104 = vector.extract_strided_slice %6 {offsets = [10, 0], sizes = [2, 128], strides = [1, 1]} : vector<16x128xf32> to vector<2x128xf32>
    %cst_25 = arith.constant dense<0.000000e+00> : vector<2x128xf32>
    %105 = tpu.matmul %102, %2, %cst_25 {dimension_numbers = #tpu.dot_dimension_numbers<[1], [0], [0], [1], [0, 0, 1, 1], [], []>} : vector<2x32xf32>, vector<32x128xf32>, vector<2x128xf32> -> vector<2x128xf32>
    %106 = arith.addf %104, %105 : vector<2x128xf32>
    %107 = arith.negf %106 : vector<2x128xf32>
    %108 = math.exp %107 : vector<2x128xf32>
    %cst_26 = arith.constant 1.000000e+00 : f32
    %109 = vector.broadcast %cst_26 : f32 to vector<2x128xf32>
    %110 = arith.addf %109, %108 : vector<2x128xf32>
    %111 = arith.divf %109, %110 : vector<2x128xf32>
    %112 = math.tanh %106 : vector<2x128xf32>
    %113 = vector.extract_strided_slice %111 {offsets = [0, 0], sizes = [2, 32], strides = [1, 1]} : vector<2x128xf32> to vector<2x32xf32>
    %114 = vector.extract_strided_slice %111 {offsets = [0, 32], sizes = [2, 32], strides = [1, 1]} : vector<2x128xf32> to vector<2x32xf32>
    %115 = vector.extract_strided_slice %112 {offsets = [0, 64], sizes = [2, 32], strides = [1, 1]} : vector<2x128xf32> to vector<2x32xf32>
    %116 = vector.extract_strided_slice %111 {offsets = [0, 96], sizes = [2, 32], strides = [1, 1]} : vector<2x128xf32> to vector<2x32xf32>
    %117 = arith.mulf %114, %100 : vector<2x32xf32>
    %118 = arith.mulf %113, %115 : vector<2x32xf32>
    %119 = arith.addf %117, %118 : vector<2x32xf32>
    %120 = math.tanh %119 : vector<2x32xf32>
    %121 = arith.mulf %116, %120 : vector<2x32xf32>
    %c10 = arith.constant 10 : index
    %c0_27 = arith.constant 0 : index
    %122 = vector.load %arg11[%c10, %c0_27] : memref<16x32xf32, #tpu.memory_space<vmem>>, vector<2x32xf32>
    tpu.vector_store %arg11[%c10, %c0_27], %121 {strides = array<i32>} : memref<16x32xf32, #tpu.memory_space<vmem>>, vector<2x32xf32>,
    %123 = vector.extract_strided_slice %6 {offsets = [12, 0], sizes = [2, 128], strides = [1, 1]} : vector<16x128xf32> to vector<2x128xf32>
    %cst_28 = arith.constant dense<0.000000e+00> : vector<2x128xf32>
    %124 = tpu.matmul %121, %2, %cst_28 {dimension_numbers = #tpu.dot_dimension_numbers<[1], [0], [0], [1], [0, 0, 1, 1], [], []>} : vector<2x32xf32>, vector<32x128xf32>, vector<2x128xf32> -> vector<2x128xf32>
    %125 = arith.addf %123, %124 : vector<2x128xf32>
    %126 = arith.negf %125 : vector<2x128xf32>
    %127 = math.exp %126 : vector<2x128xf32>
    %cst_29 = arith.constant 1.000000e+00 : f32
    %128 = vector.broadcast %cst_29 : f32 to vector<2x128xf32>
    %129 = arith.addf %128, %127 : vector<2x128xf32>
    %130 = arith.divf %128, %129 : vector<2x128xf32>
    %131 = math.tanh %125 : vector<2x128xf32>
    %132 = vector.extract_strided_slice %130 {offsets = [0, 0], sizes = [2, 32], strides = [1, 1]} : vector<2x128xf32> to vector<2x32xf32>
    %133 = vector.extract_strided_slice %130 {offsets = [0, 32], sizes = [2, 32], strides = [1, 1]} : vector<2x128xf32> to vector<2x32xf32>
    %134 = vector.extract_strided_slice %131 {offsets = [0, 64], sizes = [2, 32], strides = [1, 1]} : vector<2x128xf32> to vector<2x32xf32>
    %135 = vector.extract_strided_slice %130 {offsets = [0, 96], sizes = [2, 32], strides = [1, 1]} : vector<2x128xf32> to vector<2x32xf32>
    %136 = arith.mulf %133, %119 : vector<2x32xf32>
    %137 = arith.mulf %132, %134 : vector<2x32xf32>
    %138 = arith.addf %136, %137 : vector<2x32xf32>
    %139 = math.tanh %138 : vector<2x32xf32>
    %140 = arith.mulf %135, %139 : vector<2x32xf32>
    %c12 = arith.constant 12 : index
    %c0_30 = arith.constant 0 : index
    %141 = vector.load %arg11[%c12, %c0_30] : memref<16x32xf32, #tpu.memory_space<vmem>>, vector<2x32xf32>
    tpu.vector_store %arg11[%c12, %c0_30], %140 {strides = array<i32>} : memref<16x32xf32, #tpu.memory_space<vmem>>, vector<2x32xf32>,
    %142 = vector.extract_strided_slice %6 {offsets = [14, 0], sizes = [2, 128], strides = [1, 1]} : vector<16x128xf32> to vector<2x128xf32>
    %cst_31 = arith.constant dense<0.000000e+00> : vector<2x128xf32>
    %143 = tpu.matmul %140, %2, %cst_31 {dimension_numbers = #tpu.dot_dimension_numbers<[1], [0], [0], [1], [0, 0, 1, 1], [], []>} : vector<2x32xf32>, vector<32x128xf32>, vector<2x128xf32> -> vector<2x128xf32>
    %144 = arith.addf %142, %143 : vector<2x128xf32>
    %145 = arith.negf %144 : vector<2x128xf32>
    %146 = math.exp %145 : vector<2x128xf32>
    %cst_32 = arith.constant 1.000000e+00 : f32
    %147 = vector.broadcast %cst_32 : f32 to vector<2x128xf32>
    %148 = arith.addf %147, %146 : vector<2x128xf32>
    %149 = arith.divf %147, %148 : vector<2x128xf32>
    %150 = math.tanh %144 : vector<2x128xf32>
    %151 = vector.extract_strided_slice %149 {offsets = [0, 0], sizes = [2, 32], strides = [1, 1]} : vector<2x128xf32> to vector<2x32xf32>
    %152 = vector.extract_strided_slice %149 {offsets = [0, 32], sizes = [2, 32], strides = [1, 1]} : vector<2x128xf32> to vector<2x32xf32>
    %153 = vector.extract_strided_slice %150 {offsets = [0, 64], sizes = [2, 32], strides = [1, 1]} : vector<2x128xf32> to vector<2x32xf32>
    %154 = vector.extract_strided_slice %149 {offsets = [0, 96], sizes = [2, 32], strides = [1, 1]} : vector<2x128xf32> to vector<2x32xf32>
    %155 = arith.mulf %152, %138 : vector<2x32xf32>
    %156 = arith.mulf %151, %153 : vector<2x32xf32>
    %157 = arith.addf %155, %156 : vector<2x32xf32>
    %158 = math.tanh %157 : vector<2x32xf32>
    %159 = arith.mulf %154, %158 : vector<2x32xf32>
    %c14 = arith.constant 14 : index
    %c0_33 = arith.constant 0 : index
    %160 = vector.load %arg11[%c14, %c0_33] : memref<16x32xf32, #tpu.memory_space<vmem>>, vector<2x32xf32>
    tpu.vector_store %arg11[%c14, %c0_33], %159 {strides = array<i32>} : memref<16x32xf32, #tpu.memory_space<vmem>>, vector<2x32xf32>,
    %c0_34 = arith.constant 0 : index
    %c0_35 = arith.constant 0 : index
    %161 = vector.load %arg11[%c0_34, %c0_35] : memref<16x32xf32, #tpu.memory_space<vmem>>, vector<16x32xf32>
    %c0_36 = arith.constant 0 : index
    %c0_37 = arith.constant 0 : index
    %162 = vector.load %arg4[%c0_36, %c0_37] : memref<32x128xf32, #tpu.memory_space<vmem>>, vector<32x128xf32>
    %c0_38 = arith.constant 0 : index
    %c0_39 = arith.constant 0 : index
    %163 = vector.load %arg5[%c0_38, %c0_39] : memref<32x128xf32, #tpu.memory_space<vmem>>, vector<32x128xf32>
    %c0_40 = arith.constant 0 : index
    %c0_41 = arith.constant 0 : index
    %164 = vector.load %arg6[%c0_40, %c0_41] : memref<1x128xf32, #tpu.memory_space<vmem>>, vector<1x128xf32>
    %cst_42 = arith.constant dense<0.000000e+00> : vector<16x128xf32>
    %165 = tpu.matmul %161, %162, %cst_42 {dimension_numbers = #tpu.dot_dimension_numbers<[1], [0], [0], [1], [0, 0, 1, 1], [], []>} : vector<16x32xf32>, vector<32x128xf32>, vector<16x128xf32> -> vector<16x128xf32>
    %166 = vector.broadcast %164 : vector<1x128xf32> to vector<16x128xf32>
    %167 = arith.addf %165, %166 : vector<16x128xf32>
    %cst_43 = arith.constant 0.000000e+00 : f32
    %168 = vector.broadcast %cst_43 : f32 to vector<2x32xf32>
    %cst_44 = arith.constant 0.000000e+00 : f32
    %169 = vector.broadcast %cst_44 : f32 to vector<2x32xf32>
    %170 = vector.extract_strided_slice %167 {offsets = [0, 0], sizes = [2, 128], strides = [1, 1]} : vector<16x128xf32> to vector<2x128xf32>
    %cst_45 = arith.constant dense<0.000000e+00> : vector<2x128xf32>
    %171 = tpu.matmul %168, %163, %cst_45 {dimension_numbers = #tpu.dot_dimension_numbers<[1], [0], [0], [1], [0, 0, 1, 1], [], []>} : vector<2x32xf32>, vector<32x128xf32>, vector<2x128xf32> -> vector<2x128xf32>
    %172 = arith.addf %170, %171 : vector<2x128xf32>
    %173 = arith.negf %172 : vector<2x128xf32>
    %174 = math.exp %173 : vector<2x128xf32>
    %cst_46 = arith.constant 1.000000e+00 : f32
    %175 = vector.broadcast %cst_46 : f32 to vector<2x128xf32>
    %176 = arith.addf %175, %174 : vector<2x128xf32>
    %177 = arith.divf %175, %176 : vector<2x128xf32>
    %178 = math.tanh %172 : vector<2x128xf32>
    %179 = vector.extract_strided_slice %177 {offsets = [0, 0], sizes = [2, 32], strides = [1, 1]} : vector<2x128xf32> to vector<2x32xf32>
    %180 = vector.extract_strided_slice %177 {offsets = [0, 32], sizes = [2, 32], strides = [1, 1]} : vector<2x128xf32> to vector<2x32xf32>
    %181 = vector.extract_strided_slice %178 {offsets = [0, 64], sizes = [2, 32], strides = [1, 1]} : vector<2x128xf32> to vector<2x32xf32>
    %182 = vector.extract_strided_slice %177 {offsets = [0, 96], sizes = [2, 32], strides = [1, 1]} : vector<2x128xf32> to vector<2x32xf32>
    %183 = arith.mulf %180, %169 : vector<2x32xf32>
    %184 = arith.mulf %179, %181 : vector<2x32xf32>
    %185 = arith.addf %183, %184 : vector<2x32xf32>
    %186 = math.tanh %185 : vector<2x32xf32>
    %187 = arith.mulf %182, %186 : vector<2x32xf32>
    %c0_47 = arith.constant 0 : index
    %c0_48 = arith.constant 0 : index
    %188 = vector.load %arg11[%c0_47, %c0_48] : memref<16x32xf32, #tpu.memory_space<vmem>>, vector<2x32xf32>
    tpu.vector_store %arg11[%c0_47, %c0_48], %187 {strides = array<i32>} : memref<16x32xf32, #tpu.memory_space<vmem>>, vector<2x32xf32>,
    %189 = vector.extract_strided_slice %167 {offsets = [2, 0], sizes = [2, 128], strides = [1, 1]} : vector<16x128xf32> to vector<2x128xf32>
    %cst_49 = arith.constant dense<0.000000e+00> : vector<2x128xf32>
    %190 = tpu.matmul %187, %163, %cst_49 {dimension_numbers = #tpu.dot_dimension_numbers<[1], [0], [0], [1], [0, 0, 1, 1], [], []>} : vector<2x32xf32>, vector<32x128xf32>, vector<2x128xf32> -> vector<2x128xf32>
    %191 = arith.addf %189, %190 : vector<2x128xf32>
    %192 = arith.negf %191 : vector<2x128xf32>
    %193 = math.exp %192 : vector<2x128xf32>
    %cst_50 = arith.constant 1.000000e+00 : f32
    %194 = vector.broadcast %cst_50 : f32 to vector<2x128xf32>
    %195 = arith.addf %194, %193 : vector<2x128xf32>
    %196 = arith.divf %194, %195 : vector<2x128xf32>
    %197 = math.tanh %191 : vector<2x128xf32>
    %198 = vector.extract_strided_slice %196 {offsets = [0, 0], sizes = [2, 32], strides = [1, 1]} : vector<2x128xf32> to vector<2x32xf32>
    %199 = vector.extract_strided_slice %196 {offsets = [0, 32], sizes = [2, 32], strides = [1, 1]} : vector<2x128xf32> to vector<2x32xf32>
    %200 = vector.extract_strided_slice %197 {offsets = [0, 64], sizes = [2, 32], strides = [1, 1]} : vector<2x128xf32> to vector<2x32xf32>
    %201 = vector.extract_strided_slice %196 {offsets = [0, 96], sizes = [2, 32], strides = [1, 1]} : vector<2x128xf32> to vector<2x32xf32>
    %202 = arith.mulf %199, %185 : vector<2x32xf32>
    %203 = arith.mulf %198, %200 : vector<2x32xf32>
    %204 = arith.addf %202, %203 : vector<2x32xf32>
    %205 = math.tanh %204 : vector<2x32xf32>
    %206 = arith.mulf %201, %205 : vector<2x32xf32>
    %c2_51 = arith.constant 2 : index
    %c0_52 = arith.constant 0 : index
    %207 = vector.load %arg11[%c2_51, %c0_52] : memref<16x32xf32, #tpu.memory_space<vmem>>, vector<2x32xf32>
    tpu.vector_store %arg11[%c2_51, %c0_52], %206 {strides = array<i32>} : memref<16x32xf32, #tpu.memory_space<vmem>>, vector<2x32xf32>,
    %208 = vector.extract_strided_slice %167 {offsets = [4, 0], sizes = [2, 128], strides = [1, 1]} : vector<16x128xf32> to vector<2x128xf32>
    %cst_53 = arith.constant dense<0.000000e+00> : vector<2x128xf32>
    %209 = tpu.matmul %206, %163, %cst_53 {dimension_numbers = #tpu.dot_dimension_numbers<[1], [0], [0], [1], [0, 0, 1, 1], [], []>} : vector<2x32xf32>, vector<32x128xf32>, vector<2x128xf32> -> vector<2x128xf32>
    %210 = arith.addf %208, %209 : vector<2x128xf32>
    %211 = arith.negf %210 : vector<2x128xf32>
    %212 = math.exp %211 : vector<2x128xf32>
    %cst_54 = arith.constant 1.000000e+00 : f32
    %213 = vector.broadcast %cst_54 : f32 to vector<2x128xf32>
    %214 = arith.addf %213, %212 : vector<2x128xf32>
    %215 = arith.divf %213, %214 : vector<2x128xf32>
    %216 = math.tanh %210 : vector<2x128xf32>
    %217 = vector.extract_strided_slice %215 {offsets = [0, 0], sizes = [2, 32], strides = [1, 1]} : vector<2x128xf32> to vector<2x32xf32>
    %218 = vector.extract_strided_slice %215 {offsets = [0, 32], sizes = [2, 32], strides = [1, 1]} : vector<2x128xf32> to vector<2x32xf32>
    %219 = vector.extract_strided_slice %216 {offsets = [0, 64], sizes = [2, 32], strides = [1, 1]} : vector<2x128xf32> to vector<2x32xf32>
    %220 = vector.extract_strided_slice %215 {offsets = [0, 96], sizes = [2, 32], strides = [1, 1]} : vector<2x128xf32> to vector<2x32xf32>
    %221 = arith.mulf %218, %204 : vector<2x32xf32>
    %222 = arith.mulf %217, %219 : vector<2x32xf32>
    %223 = arith.addf %221, %222 : vector<2x32xf32>
    %224 = math.tanh %223 : vector<2x32xf32>
    %225 = arith.mulf %220, %224 : vector<2x32xf32>
    %c4_55 = arith.constant 4 : index
    %c0_56 = arith.constant 0 : index
    %226 = vector.load %arg11[%c4_55, %c0_56] : memref<16x32xf32, #tpu.memory_space<vmem>>, vector<2x32xf32>
    tpu.vector_store %arg11[%c4_55, %c0_56], %225 {strides = array<i32>} : memref<16x32xf32, #tpu.memory_space<vmem>>, vector<2x32xf32>,
    %227 = vector.extract_strided_slice %167 {offsets = [6, 0], sizes = [2, 128], strides = [1, 1]} : vector<16x128xf32> to vector<2x128xf32>
    %cst_57 = arith.constant dense<0.000000e+00> : vector<2x128xf32>
    %228 = tpu.matmul %225, %163, %cst_57 {dimension_numbers = #tpu.dot_dimension_numbers<[1], [0], [0], [1], [0, 0, 1, 1], [], []>} : vector<2x32xf32>, vector<32x128xf32>, vector<2x128xf32> -> vector<2x128xf32>
    %229 = arith.addf %227, %228 : vector<2x128xf32>
    %230 = arith.negf %229 : vector<2x128xf32>
    %231 = math.exp %230 : vector<2x128xf32>
    %cst_58 = arith.constant 1.000000e+00 : f32
    %232 = vector.broadcast %cst_58 : f32 to vector<2x128xf32>
    %233 = arith.addf %232, %231 : vector<2x128xf32>
    %234 = arith.divf %232, %233 : vector<2x128xf32>
    %235 = math.tanh %229 : vector<2x128xf32>
    %236 = vector.extract_strided_slice %234 {offsets = [0, 0], sizes = [2, 32], strides = [1, 1]} : vector<2x128xf32> to vector<2x32xf32>
    %237 = vector.extract_strided_slice %234 {offsets = [0, 32], sizes = [2, 32], strides = [1, 1]} : vector<2x128xf32> to vector<2x32xf32>
    %238 = vector.extract_strided_slice %235 {offsets = [0, 64], sizes = [2, 32], strides = [1, 1]} : vector<2x128xf32> to vector<2x32xf32>
    %239 = vector.extract_strided_slice %234 {offsets = [0, 96], sizes = [2, 32], strides = [1, 1]} : vector<2x128xf32> to vector<2x32xf32>
    %240 = arith.mulf %237, %223 : vector<2x32xf32>
    %241 = arith.mulf %236, %238 : vector<2x32xf32>
    %242 = arith.addf %240, %241 : vector<2x32xf32>
    %243 = math.tanh %242 : vector<2x32xf32>
    %244 = arith.mulf %239, %243 : vector<2x32xf32>
    %c6_59 = arith.constant 6 : index
    %c0_60 = arith.constant 0 : index
    %245 = vector.load %arg11[%c6_59, %c0_60] : memref<16x32xf32, #tpu.memory_space<vmem>>, vector<2x32xf32>
    tpu.vector_store %arg11[%c6_59, %c0_60], %244 {strides = array<i32>} : memref<16x32xf32, #tpu.memory_space<vmem>>, vector<2x32xf32>,
    %246 = vector.extract_strided_slice %167 {offsets = [8, 0], sizes = [2, 128], strides = [1, 1]} : vector<16x128xf32> to vector<2x128xf32>
    %cst_61 = arith.constant dense<0.000000e+00> : vector<2x128xf32>
    %247 = tpu.matmul %244, %163, %cst_61 {dimension_numbers = #tpu.dot_dimension_numbers<[1], [0], [0], [1], [0, 0, 1, 1], [], []>} : vector<2x32xf32>, vector<32x128xf32>, vector<2x128xf32> -> vector<2x128xf32>
    %248 = arith.addf %246, %247 : vector<2x128xf32>
    %249 = arith.negf %248 : vector<2x128xf32>
    %250 = math.exp %249 : vector<2x128xf32>
    %cst_62 = arith.constant 1.000000e+00 : f32
    %251 = vector.broadcast %cst_62 : f32 to vector<2x128xf32>
    %252 = arith.addf %251, %250 : vector<2x128xf32>
    %253 = arith.divf %251, %252 : vector<2x128xf32>
    %254 = math.tanh %248 : vector<2x128xf32>
    %255 = vector.extract_strided_slice %253 {offsets = [0, 0], sizes = [2, 32], strides = [1, 1]} : vector<2x128xf32> to vector<2x32xf32>
    %256 = vector.extract_strided_slice %253 {offsets = [0, 32], sizes = [2, 32], strides = [1, 1]} : vector<2x128xf32> to vector<2x32xf32>
    %257 = vector.extract_strided_slice %254 {offsets = [0, 64], sizes = [2, 32], strides = [1, 1]} : vector<2x128xf32> to vector<2x32xf32>
    %258 = vector.extract_strided_slice %253 {offsets = [0, 96], sizes = [2, 32], strides = [1, 1]} : vector<2x128xf32> to vector<2x32xf32>
    %259 = arith.mulf %256, %242 : vector<2x32xf32>
    %260 = arith.mulf %255, %257 : vector<2x32xf32>
    %261 = arith.addf %259, %260 : vector<2x32xf32>
    %262 = math.tanh %261 : vector<2x32xf32>
    %263 = arith.mulf %258, %262 : vector<2x32xf32>
    %c8_63 = arith.constant 8 : index
    %c0_64 = arith.constant 0 : index
    %264 = vector.load %arg11[%c8_63, %c0_64] : memref<16x32xf32, #tpu.memory_space<vmem>>, vector<2x32xf32>
    tpu.vector_store %arg11[%c8_63, %c0_64], %263 {strides = array<i32>} : memref<16x32xf32, #tpu.memory_space<vmem>>, vector<2x32xf32>,
    %265 = vector.extract_strided_slice %167 {offsets = [10, 0], sizes = [2, 128], strides = [1, 1]} : vector<16x128xf32> to vector<2x128xf32>
    %cst_65 = arith.constant dense<0.000000e+00> : vector<2x128xf32>
    %266 = tpu.matmul %263, %163, %cst_65 {dimension_numbers = #tpu.dot_dimension_numbers<[1], [0], [0], [1], [0, 0, 1, 1], [], []>} : vector<2x32xf32>, vector<32x128xf32>, vector<2x128xf32> -> vector<2x128xf32>
    %267 = arith.addf %265, %266 : vector<2x128xf32>
    %268 = arith.negf %267 : vector<2x128xf32>
    %269 = math.exp %268 : vector<2x128xf32>
    %cst_66 = arith.constant 1.000000e+00 : f32
    %270 = vector.broadcast %cst_66 : f32 to vector<2x128xf32>
    %271 = arith.addf %270, %269 : vector<2x128xf32>
    %272 = arith.divf %270, %271 : vector<2x128xf32>
    %273 = math.tanh %267 : vector<2x128xf32>
    %274 = vector.extract_strided_slice %272 {offsets = [0, 0], sizes = [2, 32], strides = [1, 1]} : vector<2x128xf32> to vector<2x32xf32>
    %275 = vector.extract_strided_slice %272 {offsets = [0, 32], sizes = [2, 32], strides = [1, 1]} : vector<2x128xf32> to vector<2x32xf32>
    %276 = vector.extract_strided_slice %273 {offsets = [0, 64], sizes = [2, 32], strides = [1, 1]} : vector<2x128xf32> to vector<2x32xf32>
    %277 = vector.extract_strided_slice %272 {offsets = [0, 96], sizes = [2, 32], strides = [1, 1]} : vector<2x128xf32> to vector<2x32xf32>
    %278 = arith.mulf %275, %261 : vector<2x32xf32>
    %279 = arith.mulf %274, %276 : vector<2x32xf32>
    %280 = arith.addf %278, %279 : vector<2x32xf32>
    %281 = math.tanh %280 : vector<2x32xf32>
    %282 = arith.mulf %277, %281 : vector<2x32xf32>
    %c10_67 = arith.constant 10 : index
    %c0_68 = arith.constant 0 : index
    %283 = vector.load %arg11[%c10_67, %c0_68] : memref<16x32xf32, #tpu.memory_space<vmem>>, vector<2x32xf32>
    tpu.vector_store %arg11[%c10_67, %c0_68], %282 {strides = array<i32>} : memref<16x32xf32, #tpu.memory_space<vmem>>, vector<2x32xf32>,
    %284 = vector.extract_strided_slice %167 {offsets = [12, 0], sizes = [2, 128], strides = [1, 1]} : vector<16x128xf32> to vector<2x128xf32>
    %cst_69 = arith.constant dense<0.000000e+00> : vector<2x128xf32>
    %285 = tpu.matmul %282, %163, %cst_69 {dimension_numbers = #tpu.dot_dimension_numbers<[1], [0], [0], [1], [0, 0, 1, 1], [], []>} : vector<2x32xf32>, vector<32x128xf32>, vector<2x128xf32> -> vector<2x128xf32>
    %286 = arith.addf %284, %285 : vector<2x128xf32>
    %287 = arith.negf %286 : vector<2x128xf32>
    %288 = math.exp %287 : vector<2x128xf32>
    %cst_70 = arith.constant 1.000000e+00 : f32
    %289 = vector.broadcast %cst_70 : f32 to vector<2x128xf32>
    %290 = arith.addf %289, %288 : vector<2x128xf32>
    %291 = arith.divf %289, %290 : vector<2x128xf32>
    %292 = math.tanh %286 : vector<2x128xf32>
    %293 = vector.extract_strided_slice %291 {offsets = [0, 0], sizes = [2, 32], strides = [1, 1]} : vector<2x128xf32> to vector<2x32xf32>
    %294 = vector.extract_strided_slice %291 {offsets = [0, 32], sizes = [2, 32], strides = [1, 1]} : vector<2x128xf32> to vector<2x32xf32>
    %295 = vector.extract_strided_slice %292 {offsets = [0, 64], sizes = [2, 32], strides = [1, 1]} : vector<2x128xf32> to vector<2x32xf32>
    %296 = vector.extract_strided_slice %291 {offsets = [0, 96], sizes = [2, 32], strides = [1, 1]} : vector<2x128xf32> to vector<2x32xf32>
    %297 = arith.mulf %294, %280 : vector<2x32xf32>
    %298 = arith.mulf %293, %295 : vector<2x32xf32>
    %299 = arith.addf %297, %298 : vector<2x32xf32>
    %300 = math.tanh %299 : vector<2x32xf32>
    %301 = arith.mulf %296, %300 : vector<2x32xf32>
    %c12_71 = arith.constant 12 : index
    %c0_72 = arith.constant 0 : index
    %302 = vector.load %arg11[%c12_71, %c0_72] : memref<16x32xf32, #tpu.memory_space<vmem>>, vector<2x32xf32>
    tpu.vector_store %arg11[%c12_71, %c0_72], %301 {strides = array<i32>} : memref<16x32xf32, #tpu.memory_space<vmem>>, vector<2x32xf32>,
    %303 = vector.extract_strided_slice %167 {offsets = [14, 0], sizes = [2, 128], strides = [1, 1]} : vector<16x128xf32> to vector<2x128xf32>
    %cst_73 = arith.constant dense<0.000000e+00> : vector<2x128xf32>
    %304 = tpu.matmul %301, %163, %cst_73 {dimension_numbers = #tpu.dot_dimension_numbers<[1], [0], [0], [1], [0, 0, 1, 1], [], []>} : vector<2x32xf32>, vector<32x128xf32>, vector<2x128xf32> -> vector<2x128xf32>
    %305 = arith.addf %303, %304 : vector<2x128xf32>
    %306 = arith.negf %305 : vector<2x128xf32>
    %307 = math.exp %306 : vector<2x128xf32>
    %cst_74 = arith.constant 1.000000e+00 : f32
    %308 = vector.broadcast %cst_74 : f32 to vector<2x128xf32>
    %309 = arith.addf %308, %307 : vector<2x128xf32>
    %310 = arith.divf %308, %309 : vector<2x128xf32>
    %311 = math.tanh %305 : vector<2x128xf32>
    %312 = vector.extract_strided_slice %310 {offsets = [0, 0], sizes = [2, 32], strides = [1, 1]} : vector<2x128xf32> to vector<2x32xf32>
    %313 = vector.extract_strided_slice %310 {offsets = [0, 32], sizes = [2, 32], strides = [1, 1]} : vector<2x128xf32> to vector<2x32xf32>
    %314 = vector.extract_strided_slice %311 {offsets = [0, 64], sizes = [2, 32], strides = [1, 1]} : vector<2x128xf32> to vector<2x32xf32>
    %315 = vector.extract_strided_slice %310 {offsets = [0, 96], sizes = [2, 32], strides = [1, 1]} : vector<2x128xf32> to vector<2x32xf32>
    %316 = arith.mulf %313, %299 : vector<2x32xf32>
    %317 = arith.mulf %312, %314 : vector<2x32xf32>
    %318 = arith.addf %316, %317 : vector<2x32xf32>
    %319 = math.tanh %318 : vector<2x32xf32>
    %320 = arith.mulf %315, %319 : vector<2x32xf32>
    %c14_75 = arith.constant 14 : index
    %c0_76 = arith.constant 0 : index
    %321 = vector.load %arg11[%c14_75, %c0_76] : memref<16x32xf32, #tpu.memory_space<vmem>>, vector<2x32xf32>
    tpu.vector_store %arg11[%c14_75, %c0_76], %320 {strides = array<i32>} : memref<16x32xf32, #tpu.memory_space<vmem>>, vector<2x32xf32>,
    %c0_77 = arith.constant 0 : index
    %c0_78 = arith.constant 0 : index
    %322 = vector.load %arg11[%c0_77, %c0_78] : memref<16x32xf32, #tpu.memory_space<vmem>>, vector<16x32xf32>
    %cst_79 = arith.constant 0.000000e+00 : f32
    %323 = vector.broadcast %cst_79 : f32 to vector<16x32xf32>
    %324 = arith.maximumf %322, %323 : vector<16x32xf32>
    %c0_80 = arith.constant 0 : index
    %c0_81 = arith.constant 0 : index
    %325 = vector.load %arg7[%c0_80, %c0_81] : memref<32x8xf32, #tpu.memory_space<vmem>>, vector<32x8xf32>
    %cst_82 = arith.constant dense<0.000000e+00> : vector<16x8xf32>
    %326 = tpu.matmul %324, %325, %cst_82 {dimension_numbers = #tpu.dot_dimension_numbers<[1], [0], [0], [1], [0, 0, 1, 1], [], []>} : vector<16x32xf32>, vector<32x8xf32>, vector<16x8xf32> -> vector<16x8xf32>
    %c0_83 = arith.constant 0 : index
    %c0_84 = arith.constant 0 : index
    %327 = vector.load %arg8[%c0_83, %c0_84] : memref<1x8xf32, #tpu.memory_space<vmem>>, vector<1x8xf32>
    %328 = vector.broadcast %327 : vector<1x8xf32> to vector<16x8xf32>
    %329 = arith.addf %326, %328 : vector<16x8xf32>
    %c0_85 = arith.constant 0 : index
    %c0_86 = arith.constant 0 : index
    %330 = vector.load %arg9[%c0_85, %c0_86] : memref<16x8xf32, #tpu.memory_space<vmem>>, vector<16x8xf32>
    %cst_87 = arith.constant 0.000000e+00 : f32
    %331 = vector.broadcast %cst_87 : f32 to vector<16x8xf32>
    %332 = arith.cmpf one, %330, %331 : vector<16x8xf32>
    %cst_88 = arith.constant -1.000000e+30 : f32
    %333 = vector.broadcast %cst_88 : f32 to vector<16x8xf32>
    %334 = arith.select %332, %329, %333 : vector<16x8xi1>, vector<16x8xf32>
    %cst_89 = arith.constant dense<0xFF800000> : vector<16xf32>
    %335 = vector.multi_reduction <maximumf>, %334, %cst_89 [1] : vector<16x8xf32> to vector<16xf32>
    %336 = vector.shape_cast %335 : vector<16xf32> to vector<16x1xf32>
    %337 = vector.broadcast %336 : vector<16x1xf32> to vector<16x8xf32>
    %338 = arith.subf %334, %337 : vector<16x8xf32>
    %339 = math.exp %338 : vector<16x8xf32>
    %cst_90 = arith.constant dense<0.000000e+00> : vector<16xf32>
    %340 = vector.multi_reduction <add>, %339, %cst_90 [1] : vector<16x8xf32> to vector<16xf32>
    %341 = vector.shape_cast %340 : vector<16xf32> to vector<16x1xf32>
    %342 = tpu.reciprocal %341 {approx = true} : vector<16x1xf32> -> vector<16x1xf32>
    %343 = vector.broadcast %342 : vector<16x1xf32> to vector<16x8xf32>
    %344 = arith.mulf %339, %343 : vector<16x8xf32>
    %c0_91 = arith.constant 0 : index
    %c0_92 = arith.constant 0 : index
    %345 = vector.load %arg10[%c0_91, %c0_92] : memref<16x8xf32, #tpu.memory_space<vmem>>, vector<16x8xf32>
    tpu.vector_store %arg10[%c0_91, %c0_92], %344 {strides = array<i32>} : memref<16x8xf32, #tpu.memory_space<vmem>>, vector<16x8xf32>,
    return
  }
}

</mosaic_0001>

<bundles_post_ra>
// kernel: _fused_forward.1
= control target key start
LH: loop header
LB: loop body
LE: loop exit
PB: predicated region body
PF: predicated region fallthrough
CT: control target
= control target key end

     0   :  { %15 = vsyncpa [#allocation4], 0  ;;  %s2024_s0 = inlined_call_operand.vmem [shape: f32[16,4], index: 0, kind: input, shape index: {}]   ;;  %s2025_s1 = inlined_call_operand.vmem [shape: f32[4,128], index: 1, kind: input, shape index: {}]   ;;  %s2026_s2 = inlined_call_operand.vmem [shape: f32[32,128], index: 2, kind: input, shape index: {}]   ;;  %s2027_s3 = inlined_call_operand.vmem [shape: f32[1,128], index: 3, kind: input, shape index: {}]   ;;  %s2028_s4 = inlined_call_operand.hbm [shape: f32[32,128], index: 4, kind: input, shape index: {}]   ;;  %s2029_s5 = inlined_call_operand.hbm [shape: f32[32,128], index: 5, kind: input, shape index: {}]   ;;  %s2030_s6 = inlined_call_operand.vmem [shape: f32[1,128], index: 6, kind: input, shape index: {}]   ;;  %s2031_s7 = inlined_call_operand.vmem [shape: f32[32,8], index: 7, kind: input, shape index: {}]   ;;  %s2032_s8 = inlined_call_operand.vmem [shape: f32[1,8], index: 8, kind: input, shape index: {}]   ;;  %s2033_s9 = inlined_call_operand.vmem [shape: f32[16,8], index: 9, kind: input, shape index: {}]   ;;  %s2034_s10 = inlined_call_operand.hbm [shape: f32[16,8], index: 10, kind: output, shape index: {}]  }
   0x1   :  { %16 = vsyncpa [#allocation7], 0 }
   0x2   :  { %17 = vsyncpa [#allocation5], 0  ;;  %s30_s15 = sshll.u32 %s2028_s4, 4  ;;  %s1663_s16 = smov [#allocation3]   ;;  %s31_s15 = int_to_ptr.hbm [resolvable:$true] %s30_s15 }
   0x3   :  { %s32_s17 = sshll.u32 %s1663_s16, 4  ;;  %s43_s20 = sshll.u32 %s2029_s5, 4  ;;  %s33_s17 = int_to_ptr.vmem [resolvable:$true] %s32_s17  ;;  %s44_s20 = int_to_ptr.hbm [resolvable:$true] %s43_s20 }
   0x4   :  { %s1664_s21 = smov 128   ;;  %s1665_s22 = smov 8  }
   0x5   :  { %38 = dma.hbm_to_vmem [thread:$0]  %s31_s15, 512, %s33_s17, [#allocation4], %s1664_s21, %s1664_s21, %s1665_s22  }
   0x6   :  { %s1666_s23 = smov [#allocation6]  }
   0x7   :  { %s45_s24 = sshll.u32 %s1666_s23, 4  ;;  %s46_s24 = int_to_ptr.vmem [resolvable:$true] %s45_s24 }
   0x8   :  { %51 = dma.hbm_to_vmem [thread:$0]  %s44_s20, 512, %s46_s24, [#allocation7], %s1664_s21, %s1664_s21, %s1665_s22  }
   0x9   :  { %1657 = dma.done.wait [#allocation4], 512  }
   0xa   :  { %1658 = vsyncadd [#allocation4], 4294966784 }
   0xb   :  { %1659 = dma.done.wait [#allocation7], 512  }
   0xc   :  { %1660 = vsyncadd [#allocation7], 4294966784  ;;  %vm86_vm0 = vcmask 1043456   ;;  %vm79_vm1 = vcmask 31744   ;;  %v70_v0 = vld [vmem:[%s2025_s1] sm:$0xf] }
   0xd   :  { %v69_v1 = vld [vmem:[%s2024_s0 + $0x8] sm:$0xff]  ;;  %v74_v2 = vld [vmem:[%s2026_s2 + $0x18] sm:$0xff]  ;;  %1437 = vmatpush.msk.msra.mxu1 %vm86_vm0, %v70_v0  ;;  %1400 = vmatpush.msk.msra.mxu0 %vm86_vm0, %v70_v0  ;;  %v68_v3 = vld [vmem:[%s2024_s0] sm:$0xff]  ;;  %v1667_v7 = vmov 0.0   ;;  %s1668_s16 = smov 64   ;;  %vm179_vm6 = vcmask 254976  }
   0xe   :  { %1402 = vmatmul.msk.f32.vlgmr.msra.gmra.mxu1 %vm79_vm1, %v69_v1  ;;  %v73_v4 = vld [vmem:[%s2026_s2 + $0x10] sm:$0xff]  ;;  %1401 = vmatmul.msk.f32.vlgmr.msra.gmra.mxu0 %vm79_vm1, %v68_v3  ;;  %v72_v5 = vld [vmem:[%s2026_s2 + $0x8] sm:$0xff]  ;;  %v71_v6 = vld [vmem:[%s2026_s2] sm:$0xff]  ;;  %vm113_vm7 = vcmask 261120   ;;  %s1386_s1 = sshll.u32 %s2034_s10, 4  ;;  %s1387_s1 = int_to_ptr.hbm [resolvable:$true] %s1386_s1 }
   0xf   :  { %129 = vmatpush.msrb.mxu1 %v74_v2  ;;  %195 = vmatpush.msra.mxu2 %v74_v2  ;;  %v1446_v8 = vld [vmem:[%s2027_s3] ss:$0 sm:$0xff]  ;;  %s1669_s3 = smov 32  }
  0x10   :  { %270 = vmatpush.msra.mxu3 %v74_v2  ;;  %562 = vmatpush.msrb.mxu0 %v74_v2 }
  0x11   :  { %130 = vmatpush.msrb.mxu1 %v73_v4  ;;  %196 = vmatpush.msra.mxu2 %v73_v4 }
  0x12   :  { %271 = vmatpush.msra.mxu3 %v73_v4  ;;  %563 = vmatpush.msrb.mxu0 %v73_v4 }
  0x13   :  { %131 = vmatpush.msrb.mxu1 %v72_v5  ;;  %197 = vmatpush.msra.mxu2 %v72_v5 }
  0x14   :  { %272 = vmatpush.msra.mxu3 %v72_v5  ;;  %564 = vmatpush.msrb.mxu0 %v72_v5 }
  0x15   :  { %132 = vmatpush.msrb.mxu1 %v71_v6  ;;  %198 = vmatpush.msra.mxu2 %v71_v6 }
  0x16   :  { %133 = vmatmul.f32.vlgmr.msrb.gmra.mxu1 %v1667_v7  ;;  %273 = vmatpush.msra.mxu3 %v71_v6 }
  0x17   :  { %345 = vmatpush.msra.mxu1 %v74_v2  ;;  %420 = vmatpush.msrb.mxu2 %v74_v2 }
  0x18   :  { %488 = vmatpush.msrb.mxu3 %v74_v2  ;;  %565 = vmatpush.msrb.mxu0 %v71_v6 }
  0x19   :  { %346 = vmatpush.msra.mxu1 %v73_v4  ;;  %421 = vmatpush.msrb.mxu2 %v73_v4 }
  0x1a   :  { %489 = vmatpush.msrb.mxu3 %v73_v4 }
  0x1b   :  { %347 = vmatpush.msra.mxu1 %v72_v5  ;;  %422 = vmatpush.msrb.mxu2 %v72_v5 }
  0x1c   :  { %490 = vmatpush.msrb.mxu3 %v72_v5 }
  0x1d   :  { %348 = vmatpush.msra.mxu1 %v71_v6  ;;  %423 = vmatpush.msrb.mxu2 %v71_v6 }
  0x1e   :  { %491 = vmatpush.msrb.mxu3 %v71_v6 }
  0x1f   :  { %636 = vmatpush.msrb.mxu1 %v74_v2 }
  0x21   :  { %637 = vmatpush.msrb.mxu1 %v73_v4 }
  0x23   :  { %638 = vmatpush.msrb.mxu1 %v72_v5 }
  0x25   :  { %639 = vmatpush.msrb.mxu1 %v71_v6 }
  0x8b   :  { %v110_v9 = vpop.f32.mrf.mxu1  ;;  %v107_v11 = vpop.f32.mrf.mxu0 }
  0x8c   :  { %v1763_v10 = vadd.f32 %v1446_v8, %v110_v9  ;;  %v1765_v12 = vadd.f32 %v1446_v8, %v107_v11 }
  0x93   :  { %v134_v13 = vpop.f32.mrf.mxu1 }
  0x94   :  { %v137_v14 = vadd.f32 %v134_v13, %v1765_v12 }
  0x96   :  { %1449 = vtanh.f32 %v137_v14  ;;  %v1403_v16 = vmul.f32 -1.442695, %v137_v14 }
  0x98   :  { %1451 = vpow2.f32 %v1403_v16 }
  0x9c   :  { %v1450_v15 = vpop.eup %1449 }
  0x9d   :  { %160 = vrot.lane.b32.xlu0 %v1450_v15, %s1668_s16 }
  0x9e   :  { %v1452_v17 = vpop.eup %1451 }
  0x9f   :  { %v141_v18 = vadd.f32 1.0, %v1452_v17 }
  0xa1   :  { %1453 = vrcp.f32 %v141_v18  ;;  %v153_v24 = vand.u32 2147483648, %v141_v18  ;;  %vm147_vm3 = vweird.f32 %v141_v18  ;;  %v151_v25 = vand.u32 2147483647, %v141_v18 }
  0xa3   :  { %v154_v27 = vor.u32 1.1754944e-38, %v153_v24  ;;  %vm152_vm5 = vcmp.eq.f32.partialorder %v151_v25, 8.507059e+37 }
  0xa7   :  { %v1454_v19 = vpop.eup %1453 }
  0xa8   :  { %v143_v20 = vmul.f32 %v1454_v19, %v141_v18  ;;  %vm148_vm2 = vweird.f32 %v1454_v19 }
  0xa9   :  { %vm149_vm4 = vmor %vm147_vm3, %vm148_vm2 }
  0xaa   :  { %v144_v21 = vsub.f32 1.0, %v143_v20 }
  0xac   :  { %v145_v22 = vmul.f32 %v1454_v19, %v144_v21 }
  0xae   :  { %v146_v23 = vadd.f32 %v1454_v19, %v145_v22 }
  0xb0   :  { %v150_v26 = vsel %vm149_vm4, %v1454_v19, %v146_v23 }
  0xb1   :  { %v155_v29 = vsel %vm152_vm5, %v154_v27, %v150_v26 }
  0xb2   :  { %v158_v31 = vmul.f32 0.0, %v155_v29 }
 0x10f   :  { %v161_v28 = vpop.permute.xlu0 %160 }
 0x110   :  { %v163_v30 = vmul.f32 %v161_v28, %v155_v29 }
 0x112   :  { %165 = vrot.lane.b32.xlu0 %v163_v30, %s1669_s3 }
 0x184   :  { %v166_v32 = vpop.permute.xlu0 %165 }
 0x185   :  { %v168_v33 = vadd.f32 %v166_v32, %v158_v31 }
 0x187   :  { %1455 = vtanh.f32 %v168_v33  ;;  %v228_v57 = vrot.slane %v168_v33, 6 }
 0x18d   :  { %v1456_v34 = vpop.eup %1455 }
 0x18e   :  { %171 = vrot.lane.b32.xlu1 %v1456_v34, %s1668_s16 }
 0x200   :  { %v172_v35 = vpop.permute.xlu1 %171 }
 0x201   :  { %v174_v36 = vmul.f32 %v172_v35, %v155_v29 }
 0x203   :  { %176 = vrot.lane.b32.xlu1 %v174_v36, %s1669_s3 }
 0x275   :  { %v177_v37 = vpop.permute.xlu1 %176 }
 0x276   :  { %180 = vst.msk [vmem:[#allocation2] sm:$0x3] %vm179_vm6, %v177_v37  ;;  %1404 = vmatmul.msk.f32.vlgmr.msra.gmra.mxu2 %vm113_vm7, %v177_v37 }
 0x2f9   :  { %v200_v38 = vpop.f32.mrf.mxu2 }
 0x2fa   :  { %v204_v39 = vrot.slane %v200_v38, 6 }
 0x2fc   :  { %v206_v40 = vadd.f32 %v204_v39, %v1765_v12 }
 0x2fe   :  { %1457 = vtanh.f32 %v206_v40  ;;  %v1405_v42 = vmul.f32 -1.442695, %v206_v40 }
 0x300   :  { %1459 = vpow2.f32 %v1405_v42 }
 0x304   :  { %v1458_v41 = vpop.eup %1457 }
 0x305   :  { %232 = vrot.lane.b32.xlu2 %v1458_v41, %s1668_s16 }
 0x306   :  { %v1460_v43 = vpop.eup %1459 }
 0x307   :  { %v210_v44 = vadd.f32 1.0, %v1460_v43 }
 0x309   :  { %1461 = vrcp.f32 %v210_v44  ;;  %v222_v50 = vand.u32 2147483648, %v210_v44  ;;  %vm216_vm9 = vweird.f32 %v210_v44  ;;  %v220_v51 = vand.u32 2147483647, %v210_v44 }
 0x30b   :  { %v223_v53 = vor.u32 1.1754944e-38, %v222_v50  ;;  %vm221_vm11 = vcmp.eq.f32.partialorder %v220_v51, 8.507059e+37 }
 0x30f   :  { %v1462_v45 = vpop.eup %1461 }
 0x310   :  { %v212_v46 = vmul.f32 %v1462_v45, %v210_v44  ;;  %vm217_vm8 = vweird.f32 %v1462_v45 }
 0x311   :  { %vm218_vm10 = vmor %vm216_vm9, %vm217_vm8 }
 0x312   :  { %v213_v47 = vsub.f32 1.0, %v212_v46 }
 0x314   :  { %v214_v48 = vmul.f32 %v1462_v45, %v213_v47 }
 0x316   :  { %v215_v49 = vadd.f32 %v1462_v45, %v214_v48 }
 0x318   :  { %v219_v52 = vsel %vm218_vm10, %v1462_v45, %v215_v49  ;;  %vm251_vm10 = vcmask 257026  }
 0x319   :  { %v224_v55 = vsel %vm221_vm11, %v223_v53, %v219_v52  ;;  %vm326_vm11 = vcmask 259076  }
 0x31a   :  { %v230_v58 = vmul.f32 %v228_v57, %v224_v55 }
 0x35f   :  { %v233_v54 = vpop.permute.xlu2 %232 }
 0x360   :  { %v235_v56 = vmul.f32 %v233_v54, %v224_v55 }
 0x362   :  { %237 = vrot.lane.b32.xlu2 %v235_v56, %s1669_s3 }
 0x3bc   :  { %v238_v59 = vpop.permute.xlu2 %237 }
 0x3bd   :  { %v240_v60 = vadd.f32 %v238_v59, %v230_v58 }
 0x3bf   :  { %1463 = vtanh.f32 %v240_v60  ;;  %v303_v24 = vrot.slane %v240_v60, 6 }
 0x3c5   :  { %v1464_v61 = vpop.eup %1463 }
 0x3c6   :  { %243 = vrot.lane.b32.xlu0 %v1464_v61, %s1668_s16 }
 0x438   :  { %v244_v62 = vpop.permute.xlu0 %243 }
 0x439   :  { %v1778_v63 = vmul.f32 %v244_v62, %v224_v55 }
 0x43b   :  { %v253_v0 = vrot.slane %v1778_v63, 2 }
 0x43d   :  { %254 = vrot.lane.b32.xlu1 %v253_v0, %s1669_s3 }
 0x4af   :  { %v255_v1 = vpop.permute.xlu1 %254 }
 0x4b0   :  { %1406 = vmatmul.msk.f32.vlgmr.msra.gmra.mxu3 %vm113_vm7, %v255_v1 }
 0x533   :  { %v275_v2 = vpop.f32.mrf.mxu3 }
 0x534   :  { %v279_v3 = vrot.slane %v275_v2, 4 }
 0x536   :  { %v281_v4 = vadd.f32 %v279_v3, %v1765_v12 }
 0x538   :  { %1465 = vtanh.f32 %v281_v4  ;;  %v1407_v6 = vmul.f32 -1.442695, %v281_v4 }
 0x53a   :  { %1467 = vpow2.f32 %v1407_v6 }
 0x53e   :  { %v1466_v5 = vpop.eup %1465 }
 0x53f   :  { %307 = vrot.lane.b32.xlu2 %v1466_v5, %s1668_s16 }
 0x540   :  { %v1468_v8 = vpop.eup %1467 }
 0x541   :  { %v285_v9 = vadd.f32 1.0, %v1468_v8 }
 0x543   :  { %1469 = vrcp.f32 %v285_v9  ;;  %v297_v17 = vand.u32 2147483648, %v285_v9  ;;  %vm291_vm13 = vweird.f32 %v285_v9  ;;  %v295_v18 = vand.u32 2147483647, %v285_v9 }
 0x545   :  { %v298_v20 = vor.u32 1.1754944e-38, %v297_v17  ;;  %vm296_vm15 = vcmp.eq.f32.partialorder %v295_v18, 8.507059e+37 }
 0x549   :  { %v1470_v11 = vpop.eup %1469 }
 0x54a   :  { %v287_v13 = vmul.f32 %v1470_v11, %v285_v9  ;;  %vm292_vm12 = vweird.f32 %v1470_v11 }
 0x54b   :  { %vm293_vm14 = vmor %vm291_vm13, %vm292_vm12  ;;  %vm401_vm12 = vcmask 261126  }
 0x54c   :  { %v288_v14 = vsub.f32 1.0, %v287_v13 }
 0x54e   :  { %v289_v15 = vmul.f32 %v1470_v11, %v288_v14 }
 0x550   :  { %v290_v16 = vadd.f32 %v1470_v11, %v289_v15 }
 0x552   :  { %v294_v19 = vsel %vm293_vm14, %v1470_v11, %v290_v16 }
 0x553   :  { %v299_v22 = vsel %vm296_vm15, %v298_v20, %v294_v19 }
 0x554   :  { %v305_v25 = vmul.f32 %v303_v24, %v299_v22 }
 0x599   :  { %v308_v21 = vpop.permute.xlu2 %307 }
 0x59a   :  { %v310_v23 = vmul.f32 %v308_v21, %v299_v22 }
 0x59c   :  { %312 = vrot.lane.b32.xlu0 %v310_v23, %s1669_s3 }
 0x60e   :  { %v313_v26 = vpop.permute.xlu0 %312 }
 0x60f   :  { %v315_v27 = vadd.f32 %v313_v26, %v305_v25  ;;  %v698_v26 = vld [vmem:[#allocation3 + $0x18] sm:$0xff] }
 0x610   :  { %725 = vmatpush.msra.mxu2 %v698_v26 }
 0x611   :  { %1471 = vtanh.f32 %v315_v27  ;;  %v378_v51 = vrot.slane %v315_v27, 6  ;;  %v697_v27 = vld [vmem:[#allocation3 + $0x10] sm:$0xff] }
 0x612   :  { %726 = vmatpush.msra.mxu2 %v697_v27 }
 0x617   :  { %v1472_v28 = vpop.eup %1471 }
 0x618   :  { %318 = vrot.lane.b32.xlu1 %v1472_v28, %s1668_s16  ;;  %v1813_v28 = vld [vmem:[#allocation6 + $0x18] sm:$0xff] }
 0x619   :  { %748 = vmatpush.msra.mxu3 %v1813_v28  ;;  %813 = vmatpush.msra.mxu0 %v1813_v28 }
 0x68a   :  { %v319_v29 = vpop.permute.xlu1 %318 }
 0x68b   :  { %v1787_v30 = vmul.f32 %v319_v29, %v299_v22  ;;  %v1816_v29 = vld [vmem:[#allocation6 + $0x10] sm:$0xff] }
 0x68c   :  { %749 = vmatpush.msra.mxu3 %v1816_v29  ;;  %814 = vmatpush.msra.mxu0 %v1816_v29 }
 0x68d   :  { %v328_v31 = vrot.slane %v1787_v30, 4 }
 0x68f   :  { %329 = vrot.lane.b32.xlu2 %v328_v31, %s1669_s3  ;;  %v1818_v31 = vld [vmem:[#allocation6 + $0x8] sm:$0xff] }
 0x690   :  { %750 = vmatpush.msra.mxu3 %v1818_v31  ;;  %815 = vmatpush.msra.mxu0 %v1818_v31 }
 0x6e9   :  { %v330_v32 = vpop.permute.xlu2 %329 }
 0x6ea   :  { %1408 = vmatmul.msk.f32.vlgmr.msra.gmra.mxu1 %vm113_vm7, %v330_v32  ;;  %v695_v32 = vld [vmem:[#allocation3] sm:$0xff] }
 0x6eb   :  { %887 = vmatpush.msra.mxu1 %v1813_v28 }
 0x6ed   :  { %888 = vmatpush.msra.mxu1 %v1816_v29 }
 0x6ef   :  { %889 = vmatpush.msra.mxu1 %v1818_v31 }
 0x767   :  { %v350_v33 = vpop.f32.mrf.mxu1 }
 0x768   :  { %v354_v34 = vrot.slane %v350_v33, 2  ;;  %v1828_v33 = vld [vmem:[#allocation6] sm:$0xff] }
 0x769   :  { %751 = vmatpush.msra.mxu3 %v1828_v33  ;;  %816 = vmatpush.msra.mxu0 %v1828_v33 }
 0x76a   :  { %v356_v35 = vadd.f32 %v354_v34, %v1765_v12  ;;  %890 = vmatpush.msra.mxu1 %v1828_v33 }
 0x76c   :  { %1473 = vtanh.f32 %v356_v35  ;;  %v1409_v37 = vmul.f32 -1.442695, %v356_v35 }
 0x76e   :  { %1475 = vpow2.f32 %v1409_v37 }
 0x772   :  { %v1474_v36 = vpop.eup %1473 }
 0x773   :  { %382 = vrot.lane.b32.xlu0 %v1474_v36, %s1668_s16 }
 0x774   :  { %v1476_v38 = vpop.eup %1475 }
 0x775   :  { %v360_v39 = vadd.f32 1.0, %v1476_v38 }
 0x777   :  { %1477 = vrcp.f32 %v360_v39  ;;  %v372_v45 = vand.u32 2147483648, %v360_v39  ;;  %vm366_vm1 = vweird.f32 %v360_v39  ;;  %v370_v46 = vand.u32 2147483647, %v360_v39 }
 0x779   :  { %v373_v47 = vor.u32 1.1754944e-38, %v372_v45  ;;  %vm371_vm3 = vcmp.eq.f32.partialorder %v370_v46, 8.507059e+37 }
 0x77d   :  { %v1478_v40 = vpop.eup %1477 }
 0x77e   :  { %v362_v41 = vmul.f32 %v1478_v40, %v360_v39  ;;  %vm367_vm0 = vweird.f32 %v1478_v40 }
 0x77f   :  { %vm368_vm2 = vmor %vm366_vm1, %vm367_vm0 }
 0x780   :  { %v363_v42 = vsub.f32 1.0, %v362_v41 }
 0x782   :  { %v364_v43 = vmul.f32 %v1478_v40, %v363_v42 }
 0x784   :  { %v365_v44 = vadd.f32 %v1478_v40, %v364_v43 }
 0x786   :  { %v369_v12 = vsel %vm368_vm2, %v1478_v40, %v365_v44 }
 0x787   :  { %v374_v49 = vsel %vm371_vm3, %v373_v47, %v369_v12 }
 0x788   :  { %v380_v52 = vmul.f32 %v378_v51, %v374_v49 }
 0x7e5   :  { %v383_v48 = vpop.permute.xlu0 %382 }
 0x7e6   :  { %v385_v50 = vmul.f32 %v383_v48, %v374_v49 }
 0x7e8   :  { %387 = vrot.lane.b32.xlu1 %v385_v50, %s1669_s3 }
 0x85a   :  { %v388_v53 = vpop.permute.xlu1 %387 }
 0x85b   :  { %v390_v54 = vadd.f32 %v388_v53, %v380_v52 }
 0x85d   :  { %1479 = vtanh.f32 %v390_v54  ;;  %v450_v18 = vrot.slane %v390_v54, 6 }
 0x863   :  { %v1480_v55 = vpop.eup %1479 }
 0x864   :  { %393 = vrot.lane.b32.xlu2 %v1480_v55, %s1668_s16 }
 0x8be   :  { %v394_v56 = vpop.permute.xlu2 %393 }
 0x8bf   :  { %v396_v57 = vmul.f32 %v394_v56, %v374_v49 }
 0x8c1   :  { %v403_v58 = vrot.slane %v396_v57, 6 }
 0x8c3   :  { %404 = vrot.lane.b32.xlu0 %v403_v58, %s1669_s3 }
 0x935   :  { %v405_v59 = vpop.permute.xlu0 %404 }
 0x936   :  { %1410 = vmatmul.msk.f32.vlgmr.msrb.gmra.mxu2 %vm113_vm7, %v405_v59 }
 0x9b9   :  { %v425_v60 = vpop.f32.mrf.mxu2 }
 0x9ba   :  { %v428_v61 = vadd.f32 %v425_v60, %v1763_v10 }
 0x9bc   :  { %1481 = vtanh.f32 %v428_v61  ;;  %v1411_v0 = vmul.f32 -1.442695, %v428_v61 }
 0x9be   :  { %1483 = vpow2.f32 %v1411_v0 }
 0x9c2   :  { %v1482_v62 = vpop.eup %1481 }
 0x9c3   :  { %454 = vrot.lane.b32.xlu1 %v1482_v62, %s1668_s16 }
 0x9c4   :  { %v1484_v1 = vpop.eup %1483 }
 0x9c5   :  { %v432_v2 = vadd.f32 1.0, %v1484_v1 }
 0x9c7   :  { %1485 = vrcp.f32 %v432_v2  ;;  %v444_v9 = vand.u32 2147483648, %v432_v2  ;;  %vm438_vm5 = vweird.f32 %v432_v2  ;;  %v442_v11 = vand.u32 2147483647, %v432_v2 }
 0x9c9   :  { %v445_v14 = vor.u32 1.1754944e-38, %v444_v9  ;;  %vm443_vm9 = vcmp.eq.f32.partialorder %v442_v11, 8.507059e+37 }
 0x9cd   :  { %v1486_v3 = vpop.eup %1485 }
 0x9ce   :  { %v434_v4 = vmul.f32 %v1486_v3, %v432_v2  ;;  %vm439_vm4 = vweird.f32 %v1486_v3 }
 0x9cf   :  { %vm440_vm8 = vmor %vm438_vm5, %vm439_vm4 }
 0x9d0   :  { %v435_v5 = vsub.f32 1.0, %v434_v4 }
 0x9d2   :  { %v436_v6 = vmul.f32 %v1486_v3, %v435_v5 }
 0x9d4   :  { %v437_v8 = vadd.f32 %v1486_v3, %v436_v6 }
 0x9d6   :  { %v441_v13 = vsel %vm440_vm8, %v1486_v3, %v437_v8 }
 0x9d7   :  { %v446_v16 = vsel %vm443_vm9, %v445_v14, %v441_v13 }
 0x9d8   :  { %v452_v19 = vmul.f32 %v450_v18, %v446_v16 }
 0xa35   :  { %v455_v15 = vpop.permute.xlu1 %454 }
 0xa36   :  { %v457_v17 = vmul.f32 %v455_v15, %v446_v16 }
 0xa38   :  { %459 = vrot.lane.b32.xlu2 %v457_v17, %s1669_s3 }
 0xa40   :  { %248 = vrot.lane.b32.xlu2 %v1778_v63, %s1669_s3 }
 0xa92   :  { %v460_v20 = vpop.permute.xlu2 %459 }
 0xa93   :  { %v1803_v21 = vadd.f32 %v460_v20, %v452_v19 }
 0xa95   :  { %1487 = vtanh.f32 %v1803_v21  ;;  %v521_v15 = vrot.slane %v1803_v21, 6 }
 0xa9a   :  { %v249_v22 = vpop.permute.xlu2 %248 }
 0xa9b   :  { %v1488_v23 = vpop.eup %1487  ;;  %252 = vst.msk [vmem:[#allocation2] sm:$0xc] %vm251_vm10, %v249_v22 }
 0xa9c   :  { %465 = vrot.lane.b32.xlu0 %v1488_v23, %s1668_s16 }
 0xaa4   :  { %323 = vrot.lane.b32.xlu0 %v1787_v30, %s1669_s3  ;;  %v696_v30 = vld [vmem:[#allocation3 + $0x8] sm:$0xff] }
 0xaa5   :  { %727 = vmatpush.msra.mxu2 %v696_v30 }
 0xaa7   :  { %728 = vmatpush.msra.mxu2 %v695_v32 }
 0xaa9   :  { %1177 = vmatpush.msrb.mxu2 %v1813_v28 }
 0xaab   :  { %1178 = vmatpush.msrb.mxu2 %v1816_v29 }
 0xaad   :  { %1179 = vmatpush.msrb.mxu2 %v1818_v31 }
 0xaaf   :  { %1180 = vmatpush.msrb.mxu2 %v1828_v33 }
 0xb0e   :  { %v466_v24 = vpop.permute.xlu0 %465 }
 0xb0f   :  { %v468_v25 = vmul.f32 %v466_v24, %v446_v16 }
 0xb11   :  { %470 = vrot.lane.b32.xlu1 %v468_v25, %s1669_s3 }
 0xb16   :  { %v324_v63 = vpop.permute.xlu0 %323 }
 0xb17   :  { %327 = vst.msk [vmem:[#allocation2] sm:$0x30] %vm326_vm11, %v324_v63 }
 0xb19   :  { %398 = vrot.lane.b32.xlu1 %v396_v57, %s1669_s3 }
 0xb83   :  { %v471_v34 = vpop.permute.xlu1 %470 }
 0xb84   :  { %473 = vst.msk [vmem:[#allocation2 + $0x8] sm:$0x3] %vm179_vm6, %v471_v34  ;;  %1412 = vmatmul.msk.f32.vlgmr.msrb.gmra.mxu3 %vm113_vm7, %v471_v34 }
 0xb85   :  { %961 = vmatpush.msrb.mxu3 %v1813_v28 }
 0xb87   :  { %962 = vmatpush.msrb.mxu3 %v1816_v29 }
 0xb89   :  { %963 = vmatpush.msrb.mxu3 %v1818_v31 }
 0xb8b   :  { %v399_v35 = vpop.permute.xlu1 %398  ;;  %964 = vmatpush.msrb.mxu3 %v1828_v33 }
 0xb8c   :  { %402 = vst.msk [vmem:[#allocation2] sm:$0xc0] %vm401_vm12, %v399_v35  ;;  %752 = vmatmul.f32.vlgmr.msra.gmra.mxu3 %v1667_v7  ;;  %v1855_v7 = vld [vmem:[%s2030_s6] ss:$0 sm:$0xff] }
 0xb8d   :  { %1251 = vmatpush.msra.mxu3 %v1813_v28 }
 0xb8f   :  { %1252 = vmatpush.msra.mxu3 %v1816_v29 }
 0xb91   :  { %1253 = vmatpush.msra.mxu3 %v1818_v31 }
 0xb93   :  { %v693_v36 = vld [vmem:[#allocation2] sm:$0xff]  ;;  %1254 = vmatpush.msra.mxu3 %v1828_v33 }
 0xb94   :  { %1418 = vmatmul.msk.f32.vlgmr.msra.gmra.mxu2 %vm113_vm7, %v693_v36 }
 0xc07   :  { %v493_v37 = vpop.f32.mrf.mxu3 }
 0xc08   :  { %v497_v38 = vrot.slane %v493_v37, 6 }
 0xc0a   :  { %v499_v39 = vadd.f32 %v497_v38, %v1763_v10 }
 0xc0c   :  { %1489 = vtanh.f32 %v499_v39  ;;  %v1413_v46 = vmul.f32 -1.442695, %v499_v39 }
 0xc0f   :  { %v753_v42 = vpop.f32.mrf.mxu3 }
 0xc12   :  { %v1490_v40 = vpop.eup %1489 }
 0xc13   :  { %525 = vrot.lane.b32.xlu2 %v1490_v40, %s1668_s16 }
 0xc17   :  { %v730_v41 = vpop.f32.mrf.mxu2 }
 0xc18   :  { %v1858_v43 = vadd.f32 %v1855_v7, %v730_v41 }
 0xc1a   :  { %v756_v44 = vadd.f32 %v753_v42, %v1858_v43 }
 0xc1c   :  { %1491 = vtanh.f32 %v756_v44  ;;  %v1420_v54 = vmul.f32 -1.442695, %v756_v44 }
 0xc1d   :  { %1493 = vpow2.f32 %v1413_v46 }
 0xc22   :  { %v1492_v45 = vpop.eup %1491 }
 0xc23   :  { %779 = vrot.lane.b32.xlu0 %v1492_v45, %s1668_s16  ;;  %v1494_v12 = vpop.eup %1493 }
 0xc24   :  { %v503_v47 = vadd.f32 1.0, %v1494_v12 }
 0xc26   :  { %1495 = vrcp.f32 %v503_v47  ;;  %v515_v53 = vand.u32 2147483648, %v503_v47  ;;  %vm509_vm14 = vweird.f32 %v503_v47  ;;  %v513_v55 = vand.u32 2147483647, %v503_v47 }
 0xc27   :  { %1497 = vpow2.f32 %v1420_v54 }
 0xc28   :  { %v516_v57 = vor.u32 1.1754944e-38, %v515_v53  ;;  %vm514_vm0 = vcmp.eq.f32.partialorder %v513_v55, 8.507059e+37 }
 0xc2c   :  { %v1496_v48 = vpop.eup %1495 }
 0xc2d   :  { %v505_v49 = vmul.f32 %v1496_v48, %v503_v47  ;;  %vm510_vm13 = vweird.f32 %v1496_v48  ;;  %v1498_v61 = vpop.eup %1497 }
 0xc2e   :  { %vm511_vm15 = vmor %vm509_vm14, %vm510_vm13  ;;  %v760_v62 = vadd.f32 1.0, %v1498_v61 }
 0xc2f   :  { %v506_v50 = vsub.f32 1.0, %v505_v49 }
 0xc30   :  { %1499 = vrcp.f32 %v760_v62  ;;  %v772_v5 = vand.u32 2147483648, %v760_v62  ;;  %vm766_vm2 = vweird.f32 %v760_v62  ;;  %v770_v6 = vand.u32 2147483647, %v760_v62 }
 0xc31   :  { %v507_v51 = vmul.f32 %v1496_v48, %v506_v50 }
 0xc32   :  { %v773_v9 = vor.u32 1.1754944e-38, %v772_v5  ;;  %vm771_vm4 = vcmp.eq.f32.partialorder %v770_v6, 8.507059e+37 }
 0xc33   :  { %v508_v52 = vadd.f32 %v1496_v48, %v507_v51 }
 0xc35   :  { %v512_v56 = vsel %vm511_vm15, %v1496_v48, %v508_v52 }
 0xc36   :  { %v517_v59 = vsel %vm514_vm0, %v516_v57, %v512_v56  ;;  %v1500_v0 = vpop.eup %1499 }
 0xc37   :  { %v762_v1 = vmul.f32 %v1500_v0, %v760_v62  ;;  %vm767_vm1 = vweird.f32 %v1500_v0  ;;  %v523_v16 = vmul.f32 %v521_v15, %v517_v59 }
 0xc38   :  { %vm768_vm3 = vmor %vm766_vm2, %vm767_vm1 }
 0xc39   :  { %v763_v2 = vsub.f32 1.0, %v762_v1 }
 0xc3b   :  { %v764_v3 = vmul.f32 %v1500_v0, %v763_v2 }
 0xc3d   :  { %v765_v4 = vadd.f32 %v1500_v0, %v764_v3 }
 0xc3f   :  { %v769_v8 = vsel %vm768_vm3, %v1500_v0, %v765_v4 }
 0xc40   :  { %v774_v13 = vsel %vm771_vm4, %v773_v9, %v769_v8 }
 0xc41   :  { %v777_v20 = vmul.f32 0.0, %v774_v13 }
 0xc6d   :  { %v526_v58 = vpop.permute.xlu2 %525 }
 0xc6e   :  { %v528_v60 = vmul.f32 %v526_v58, %v517_v59 }
 0xc70   :  { %530 = vrot.lane.b32.xlu1 %v528_v60, %s1669_s3 }
 0xc95   :  { %v780_v11 = vpop.permute.xlu0 %779 }
 0xc96   :  { %v782_v14 = vmul.f32 %v780_v11, %v774_v13 }
 0xc98   :  { %784 = vrot.lane.b32.xlu2 %v782_v14, %s1669_s3 }
 0xce2   :  { %v531_v17 = vpop.permute.xlu1 %530 }
 0xce3   :  { %v1865_v18 = vadd.f32 %v531_v17, %v523_v16 }
 0xce5   :  { %1501 = vtanh.f32 %v1865_v18  ;;  %v595_v11 = vrot.slane %v1865_v18, 6 }
 0xceb   :  { %v1502_v19 = vpop.eup %1501 }
 0xcec   :  { %536 = vrot.lane.b32.xlu0 %v1502_v19, %s1668_s16 }
 0xcf2   :  { %v785_v22 = vpop.permute.xlu2 %784 }
 0xcf3   :  { %v1869_v23 = vadd.f32 %v785_v22, %v777_v20 }
 0xcf5   :  { %1503 = vtanh.f32 %v1869_v23  ;;  %v846_v17 = vrot.slane %v1869_v23, 6 }
 0xcfb   :  { %v1504_v24 = vpop.eup %1503 }
 0xcfc   :  { %790 = vrot.lane.b32.xlu1 %v1504_v24, %s1668_s16 }
 0xd5e   :  { %v537_v25 = vpop.permute.xlu0 %536 }
 0xd5f   :  { %v1873_v21 = vmul.f32 %v537_v25, %v517_v59 }
 0xd61   :  { %v545_v63 = vrot.slane %v1873_v21, 2 }
 0xd63   :  { %546 = vrot.lane.b32.xlu2 %v545_v63, %s1669_s3 }
 0xd6e   :  { %v791_v26 = vpop.permute.xlu1 %790 }
 0xd6f   :  { %v793_v27 = vmul.f32 %v791_v26, %v774_v13 }
 0xd71   :  { %795 = vrot.lane.b32.xlu0 %v793_v27, %s1669_s3 }
 0xdbd   :  { %v547_v30 = vpop.permute.xlu2 %546 }
 0xdbe   :  { %1414 = vmatmul.msk.f32.vlgmr.msrb.gmra.mxu0 %vm113_vm7, %v547_v30 }
 0xdbf   :  { %1035 = vmatpush.msrb.mxu0 %v1813_v28 }
 0xdc1   :  { %1036 = vmatpush.msrb.mxu0 %v1816_v29 }
 0xdc3   :  { %1037 = vmatpush.msrb.mxu0 %v1818_v31 }
 0xdc5   :  { %1038 = vmatpush.msrb.mxu0 %v1828_v33 }
 0xde3   :  { %v796_v32 = vpop.permute.xlu0 %795 }
 0xde4   :  { %798 = vst.msk [vmem:[#allocation2] sm:$0x3] %vm179_vm6, %v796_v32  ;;  %1421 = vmatmul.msk.f32.vlgmr.msra.gmra.mxu0 %vm113_vm7, %v796_v32 }
 0xe3b   :  { %v567_v34 = vpop.f32.mrf.mxu0 }
 0xe3c   :  { %v571_v35 = vrot.slane %v567_v34, 4 }
 0xe3e   :  { %v573_v36 = vadd.f32 %v571_v35, %v1763_v10 }
 0xe40   :  { %1505 = vtanh.f32 %v573_v36  ;;  %v1415_v42 = vmul.f32 -1.442695, %v573_v36 }
 0xe46   :  { %v1506_v37 = vpop.eup %1505 }
 0xe47   :  { %599 = vrot.lane.b32.xlu1 %v1506_v37, %s1668_s16 }
 0xe61   :  { %v818_v38 = vpop.f32.mrf.mxu0 }
 0xe62   :  { %v822_v39 = vrot.slane %v818_v38, 6 }
 0xe64   :  { %v824_v40 = vadd.f32 %v822_v39, %v1858_v43 }
 0xe66   :  { %1507 = vtanh.f32 %v824_v40  ;;  %v1422_v46 = vmul.f32 -1.442695, %v824_v40 }
 0xe67   :  { %1509 = vpow2.f32 %v1415_v42 }
 0xe6c   :  { %v1508_v41 = vpop.eup %1507 }
 0xe6d   :  { %850 = vrot.lane.b32.xlu2 %v1508_v41, %s1668_s16  ;;  %v1510_v44 = vpop.eup %1509 }
 0xe6e   :  { %v577_v45 = vadd.f32 1.0, %v1510_v44 }
 0xe70   :  { %1511 = vrcp.f32 %v577_v45  ;;  %v589_v54 = vand.u32 2147483648, %v577_v45  ;;  %vm583_vm8 = vweird.f32 %v577_v45  ;;  %v587_v55 = vand.u32 2147483647, %v577_v45 }
 0xe71   :  { %1513 = vpow2.f32 %v1422_v46 }
 0xe72   :  { %v590_v58 = vor.u32 1.1754944e-38, %v589_v54  ;;  %vm588_vm13 = vcmp.eq.f32.partialorder %v587_v55, 8.507059e+37 }
 0xe76   :  { %v1512_v12 = vpop.eup %1511 }
 0xe77   :  { %v1514_v47 = vpop.eup %1513  ;;  %v579_v48 = vmul.f32 %v1512_v12, %v577_v45  ;;  %vm584_vm5 = vweird.f32 %v1512_v12 }
 0xe78   :  { %v828_v49 = vadd.f32 1.0, %v1514_v47  ;;  %vm585_vm9 = vmor %vm583_vm8, %vm584_vm5 }
 0xe79   :  { %v580_v50 = vsub.f32 1.0, %v579_v48 }
 0xe7a   :  { %1515 = vrcp.f32 %v828_v49  ;;  %v840_v2 = vand.u32 2147483648, %v828_v49  ;;  %vm834_vm15 = vweird.f32 %v828_v49  ;;  %v838_v3 = vand.u32 2147483647, %v828_v49 }
 0xe7b   :  { %v581_v51 = vmul.f32 %v1512_v12, %v580_v50 }
 0xe7c   :  { %v841_v5 = vor.u32 1.1754944e-38, %v840_v2  ;;  %vm839_vm1 = vcmp.eq.f32.partialorder %v838_v3, 8.507059e+37 }
 0xe7d   :  { %v582_v53 = vadd.f32 %v1512_v12, %v581_v51 }
 0xe7f   :  { %v586_v57 = vsel %vm585_vm9, %v1512_v12, %v582_v53 }
 0xe80   :  { %v1516_v52 = vpop.eup %1515  ;;  %v591_v60 = vsel %vm588_vm13, %v590_v58, %v586_v57 }
 0xe81   :  { %v830_v56 = vmul.f32 %v1516_v52, %v828_v49  ;;  %vm835_vm14 = vweird.f32 %v1516_v52  ;;  %v597_v13 = vmul.f32 %v595_v11, %v591_v60 }
 0xe82   :  { %vm836_vm0 = vmor %vm834_vm15, %vm835_vm14 }
 0xe83   :  { %v831_v59 = vsub.f32 1.0, %v830_v56 }
 0xe85   :  { %v832_v0 = vmul.f32 %v1516_v52, %v831_v59 }
 0xe87   :  { %v833_v1 = vadd.f32 %v1516_v52, %v832_v0 }
 0xe89   :  { %v837_v4 = vsel %vm836_vm0, %v1516_v52, %v833_v1 }
 0xe8a   :  { %v842_v8 = vsel %vm839_vm1, %v841_v5, %v837_v4 }
 0xe8b   :  { %v848_v19 = vmul.f32 %v846_v17, %v842_v8 }
 0xeb9   :  { %v600_v61 = vpop.permute.xlu1 %599 }
 0xeba   :  { %v602_v62 = vmul.f32 %v600_v61, %v591_v60 }
 0xebc   :  { %604 = vrot.lane.b32.xlu0 %v602_v62, %s1669_s3 }
 0xec7   :  { %v851_v6 = vpop.permute.xlu2 %850 }
 0xec8   :  { %v853_v9 = vmul.f32 %v851_v6, %v842_v8 }
 0xeca   :  { %855 = vrot.lane.b32.xlu1 %v853_v9, %s1669_s3 }
 0xf2e   :  { %v605_v14 = vpop.permute.xlu0 %604 }
 0xf2f   :  { %v1892_v15 = vadd.f32 %v605_v14, %v597_v13 }
 0xf31   :  { %1517 = vtanh.f32 %v1892_v15 }
 0xf37   :  { %v1518_v16 = vpop.eup %1517 }
 0xf38   :  { %610 = vrot.lane.b32.xlu2 %v1518_v16, %s1668_s16 }
 0xf3c   :  { %v856_v20 = vpop.permute.xlu1 %855 }
 0xf3d   :  { %v858_v22 = vadd.f32 %v856_v20, %v848_v19 }
 0xf3f   :  { %1519 = vtanh.f32 %v858_v22  ;;  %v920_v53 = vrot.slane %v858_v22, 6  ;;  %v669_v22 = vrot.slane %v1892_v15, 6 }
 0xf45   :  { %v1520_v24 = vpop.eup %1519 }
 0xf46   :  { %861 = vrot.lane.b32.xlu0 %v1520_v24, %s1668_s16 }
 0xf92   :  { %v611_v25 = vpop.permute.xlu2 %610 }
 0xf93   :  { %v1898_v18 = vmul.f32 %v611_v25, %v591_v60 }
 0xf95   :  { %v619_v63 = vrot.slane %v1898_v18, 4 }
 0xf97   :  { %620 = vrot.lane.b32.xlu1 %v619_v63, %s1669_s3 }
 0xfb8   :  { %v862_v26 = vpop.permute.xlu0 %861 }
 0xfb9   :  { %v1902_v27 = vmul.f32 %v862_v26, %v842_v8 }
 0xfbb   :  { %v870_v30 = vrot.slane %v1902_v27, 2 }
 0xfbd   :  { %871 = vrot.lane.b32.xlu2 %v870_v30, %s1669_s3 }
0x1009   :  { %v621_v23 = vpop.permute.xlu1 %620 }
0x100a   :  { %1416 = vmatmul.msk.f32.vlgmr.msrb.gmra.mxu1 %vm113_vm7, %v621_v23 }
0x100b   :  { %1103 = vmatpush.msrb.mxu1 %v1813_v28 }
0x100d   :  { %1104 = vmatpush.msrb.mxu1 %v1816_v29 }
0x100f   :  { %1105 = vmatpush.msrb.mxu1 %v1818_v31 }
0x1011   :  { %1106 = vmatpush.msrb.mxu1 %v1828_v33 }
0x1017   :  { %v872_v32 = vpop.permute.xlu2 %871 }
0x1018   :  { %1423 = vmatmul.msk.f32.vlgmr.msra.gmra.mxu1 %vm113_vm7, %v872_v32 }
0x1087   :  { %v641_v34 = vpop.f32.mrf.mxu1 }
0x1088   :  { %v645_v46 = vrot.slane %v641_v34, 2 }
0x108a   :  { %v647_v48 = vadd.f32 %v645_v46, %v1763_v10 }
0x108c   :  { %v1417_v10 = vmul.f32 -1.442695, %v647_v48 }
0x1095   :  { %v892_v35 = vpop.f32.mrf.mxu1 }
0x1096   :  { %v896_v36 = vrot.slane %v892_v35, 4 }
0x1098   :  { %v898_v37 = vadd.f32 %v896_v36, %v1858_v43 }
0x109a   :  { %1521 = vtanh.f32 %v898_v37  ;;  %v1424_v39 = vmul.f32 -1.442695, %v898_v37 }
0x109c   :  { %1523 = vpow2.f32 %v1424_v39 }
0x10a0   :  { %v1522_v38 = vpop.eup %1521 }
0x10a1   :  { %924 = vrot.lane.b32.xlu0 %v1522_v38, %s1668_s16 }
0x10a2   :  { %v1524_v28 = vpop.eup %1523 }
0x10a3   :  { %v902_v29 = vadd.f32 1.0, %v1524_v28 }
0x10a5   :  { %1525 = vrcp.f32 %v902_v29  ;;  %v914_v44 = vand.u32 2147483648, %v902_v29  ;;  %vm908_vm3 = vweird.f32 %v902_v29  ;;  %v912_v45 = vand.u32 2147483647, %v902_v29 }
0x10a6   :  { %1527 = vtanh.f32 %v647_v48 }
0x10a7   :  { %v915_v47 = vor.u32 1.1754944e-38, %v914_v44  ;;  %vm913_vm5 = vcmp.eq.f32.partialorder %v912_v45, 8.507059e+37 }
0x10ab   :  { %v1526_v31 = vpop.eup %1525 }
0x10ac   :  { %v904_v40 = vmul.f32 %v1526_v31, %v902_v29  ;;  %vm909_vm2 = vweird.f32 %v1526_v31  ;;  %v1528_v52 = vpop.eup %1527 }
0x10ad   :  { %vm910_vm4 = vmor %vm908_vm3, %vm909_vm2 }
0x10ae   :  { %v905_v33 = vsub.f32 1.0, %v904_v40 }
0x10b0   :  { %v906_v41 = vmul.f32 %v1526_v31, %v905_v33 }
0x10b2   :  { %v907_v42 = vadd.f32 %v1526_v31, %v906_v41 }
0x10b4   :  { %v911_v12 = vsel %vm910_vm4, %v1526_v31, %v907_v42 }
0x10b5   :  { %v916_v50 = vsel %vm913_vm5, %v915_v47, %v911_v12 }
0x10b6   :  { %v922_v54 = vmul.f32 %v920_v53, %v916_v50 }
0x1113   :  { %v925_v49 = vpop.permute.xlu0 %924 }
0x1114   :  { %v927_v51 = vmul.f32 %v925_v49, %v916_v50 }
0x1116   :  { %929 = vrot.lane.b32.xlu1 %v927_v51, %s1669_s3 }
0x111e   :  { %673 = vrot.lane.b32.xlu1 %v1528_v52, %s1668_s16 }
0x1188   :  { %v930_v55 = vpop.permute.xlu1 %929 }
0x1189   :  { %v1917_v56 = vadd.f32 %v930_v55, %v922_v54 }
0x118b   :  { %1529 = vtanh.f32 %v1917_v56  ;;  %v994_v42 = vrot.slane %v1917_v56, 6 }
0x118c   :  { %1531 = vpow2.f32 %v1417_v10 }
0x1190   :  { %v674_v9 = vpop.permute.xlu1 %673 }
0x1191   :  { %v1530_v57 = vpop.eup %1529 }
0x1192   :  { %935 = vrot.lane.b32.xlu2 %v1530_v57, %s1668_s16  ;;  %v1532_v58 = vpop.eup %1531 }
0x1193   :  { %v651_v59 = vadd.f32 1.0, %v1532_v58 }
0x1195   :  { %1533 = vrcp.f32 %v651_v59  ;;  %v663_v5 = vand.u32 2147483648, %v651_v59  ;;  %vm657_vm9 = vweird.f32 %v651_v59  ;;  %v661_v6 = vand.u32 2147483647, %v651_v59 }
0x1197   :  { %v664_v11 = vor.u32 1.1754944e-38, %v663_v5  ;;  %vm662_vm14 = vcmp.eq.f32.partialorder %v661_v6, 8.507059e+37 }
0x119b   :  { %v1534_v60 = vpop.eup %1533 }
0x119c   :  { %v653_v61 = vmul.f32 %v1534_v60, %v651_v59  ;;  %vm658_vm8 = vweird.f32 %v1534_v60 }
0x119d   :  { %vm659_vm13 = vmor %vm657_vm9, %vm658_vm8 }
0x119e   :  { %v654_v62 = vsub.f32 1.0, %v653_v61 }
0x11a0   :  { %v655_v0 = vmul.f32 %v1534_v60, %v654_v62 }
0x11a2   :  { %v656_v3 = vadd.f32 %v1534_v60, %v655_v0 }
0x11a4   :  { %v660_v8 = vsel %vm659_vm13, %v1534_v60, %v656_v3 }
0x11a5   :  { %v665_v13 = vsel %vm662_vm14, %v664_v11, %v660_v8 }
0x11a6   :  { %v676_v14 = vmul.f32 %v674_v9, %v665_v13  ;;  %v671_v25 = vmul.f32 %v669_v22, %v665_v13 }
0x11ec   :  { %v936_v1 = vpop.permute.xlu2 %935 }
0x11ed   :  { %v1921_v2 = vmul.f32 %v936_v1, %v916_v50 }
0x11ef   :  { %v944_v4 = vrot.slane %v1921_v2, 4 }
0x11f1   :  { %945 = vrot.lane.b32.xlu0 %v944_v4, %s1669_s3 }
0x11f9   :  { %678 = vrot.lane.b32.xlu0 %v676_v14, %s1669_s3 }
0x1263   :  { %v946_v16 = vpop.permute.xlu0 %945 }
0x1264   :  { %1425 = vmatmul.msk.f32.vlgmr.msrb.gmra.mxu3 %vm113_vm7, %v946_v16 }
0x126b   :  { %v679_v24 = vpop.permute.xlu0 %678 }
0x126c   :  { %v681_v63 = vadd.f32 %v679_v24, %v671_v25 }
0x12e7   :  { %v966_v17 = vpop.f32.mrf.mxu3 }
0x12e8   :  { %v970_v19 = vrot.slane %v966_v17, 2 }
0x12ea   :  { %v972_v20 = vadd.f32 %v970_v19, %v1858_v43 }
0x12ec   :  { %1535 = vtanh.f32 %v972_v20  ;;  %v1426_v23 = vmul.f32 -1.442695, %v972_v20 }
0x12ed   :  { %1537 = vtanh.f32 %v681_v63 }
0x12ee   :  { %1539 = vpow2.f32 %v1426_v23 }
0x12f2   :  { %v1536_v26 = vpop.eup %1535 }
0x12f3   :  { %998 = vrot.lane.b32.xlu2 %v1536_v26, %s1668_s16  ;;  %v1538_v30 = vpop.eup %1537 }
0x12f4   :  { %v1540_v32 = vpop.eup %1539 }
0x12f5   :  { %v976_v43 = vadd.f32 1.0, %v1540_v32 }
0x12f7   :  { %1541 = vrcp.f32 %v976_v43  ;;  %v988_v38 = vand.u32 2147483648, %v976_v43  ;;  %vm982_vm0 = vweird.f32 %v976_v43  ;;  %v986_v39 = vand.u32 2147483647, %v976_v43 }
0x12f9   :  { %v989_v29 = vor.u32 1.1754944e-38, %v988_v38  ;;  %vm987_vm2 = vcmp.eq.f32.partialorder %v986_v39, 8.507059e+37 }
0x12fb   :  { %684 = vrot.lane.b32.xlu2 %v1538_v30, %s1668_s16 }
0x12fd   :  { %v1542_v15 = vpop.eup %1541 }
0x12fe   :  { %v978_v34 = vmul.f32 %v1542_v15, %v976_v43  ;;  %vm983_vm15 = vweird.f32 %v1542_v15 }
0x12ff   :  { %vm984_vm1 = vmor %vm982_vm0, %vm983_vm15 }
0x1300   :  { %v979_v35 = vsub.f32 1.0, %v978_v34 }
0x1302   :  { %v980_v36 = vmul.f32 %v1542_v15, %v979_v35 }
0x1303   :  { %615 = vrot.lane.b32.xlu2 %v1898_v18, %s1669_s3 }
0x1304   :  { %v981_v37 = vadd.f32 %v1542_v15, %v980_v36 }
0x1306   :  { %v985_v28 = vsel %vm984_vm1, %v1542_v15, %v981_v37 }
0x1307   :  { %v990_v18 = vsel %vm987_vm2, %v989_v29, %v985_v28 }
0x1308   :  { %v996_v44 = vmul.f32 %v994_v42, %v990_v18 }
0x134d   :  { %v999_v31 = vpop.permute.xlu2 %998 }
0x134e   :  { %v1001_v40 = vmul.f32 %v999_v31, %v990_v18 }
0x1350   :  { %1003 = vrot.lane.b32.xlu1 %v1001_v40, %s1669_s3 }
0x1355   :  { %v685_v33 = vpop.permute.xlu2 %684 }
0x1356   :  { %v687_v48 = vmul.f32 %v685_v33, %v665_v13 }
0x1358   :  { %541 = vrot.lane.b32.xlu1 %v1873_v21, %s1669_s3 }
0x135d   :  { %v616_v41 = vpop.permute.xlu2 %615 }
0x135e   :  { %618 = vst.msk [vmem:[#allocation2 + $0x8] sm:$0x30] %vm326_vm11, %v616_v41 }
0x13c2   :  { %v1004_v45 = vpop.permute.xlu1 %1003 }
0x13c3   :  { %v1006_v46 = vadd.f32 %v1004_v45, %v996_v44 }
0x13c5   :  { %1543 = vtanh.f32 %v1006_v46  ;;  %v1065_v13 = vrot.slane %v1006_v46, 6 }
0x13ca   :  { %v542_v12 = vpop.permute.xlu1 %541 }
0x13cb   :  { %v1544_v47 = vpop.eup %1543  ;;  %544 = vst.msk [vmem:[#allocation2 + $0x8] sm:$0xc] %vm251_vm10, %v542_v12 }
0x13cc   :  { %1009 = vrot.lane.b32.xlu0 %v1544_v47, %s1668_s16 }
0x13d4   :  { %689 = vrot.lane.b32.xlu0 %v687_v48, %s1669_s3 }
0x143e   :  { %v1010_v49 = vpop.permute.xlu0 %1009 }
0x143f   :  { %v1941_v21 = vmul.f32 %v1010_v49, %v990_v18 }
0x1441   :  { %v1018_v50 = vrot.slane %v1941_v21, 6 }
0x1443   :  { %1019 = vrot.lane.b32.xlu1 %v1018_v50, %s1669_s3 }
0x1446   :  { %v690_v51 = vpop.permute.xlu0 %689 }
0x1447   :  { %692 = vst.msk [vmem:[#allocation2 + $0x8] sm:$0xc0] %vm401_vm12, %v690_v51 }
0x144e   :  { %v694_v52 = vld [vmem:[#allocation2 + $0x8] sm:$0xff] }
0x144f   :  { %1419 = vmatmul.msk.f32.gmra.mxu2 %vm113_vm7, %v694_v52 }
0x14b5   :  { %v1020_v53 = vpop.permute.xlu1 %1019 }
0x14b6   :  { %1427 = vmatmul.msk.f32.vlgmr.msrb.gmra.mxu0 %vm113_vm7, %v1020_v53 }
0x14d2   :  { %v733_v54 = vpop.f32.mrf.mxu2 }
0x14d3   :  { %v1949_v55 = vadd.f32 %v1855_v7, %v733_v54 }
0x1533   :  { %v1040_v56 = vpop.f32.mrf.mxu0 }
0x1534   :  { %v1043_v57 = vadd.f32 %v1040_v56, %v1949_v55 }
0x1536   :  { %1545 = vtanh.f32 %v1043_v57  ;;  %v1428_v58 = vmul.f32 -1.442695, %v1043_v57 }
0x1538   :  { %1547 = vpow2.f32 %v1428_v58 }
0x153c   :  { %v1546_v10 = vpop.eup %1545 }
0x153d   :  { %1069 = vrot.lane.b32.xlu2 %v1546_v10, %s1668_s16 }
0x153e   :  { %v1548_v59 = vpop.eup %1547 }
0x153f   :  { %v1047_v60 = vadd.f32 1.0, %v1548_v59 }
0x1541   :  { %1549 = vrcp.f32 %v1047_v60  ;;  %v1059_v7 = vand.u32 2147483648, %v1047_v60  ;;  %vm1053_vm4 = vweird.f32 %v1047_v60  ;;  %v1057_v4 = vand.u32 2147483647, %v1047_v60 }
0x1543   :  { %v1060_v6 = vor.u32 1.1754944e-38, %v1059_v7  ;;  %vm1058_vm8 = vcmp.eq.f32.partialorder %v1057_v4, 8.507059e+37 }
0x1547   :  { %v1550_v61 = vpop.eup %1549 }
0x1548   :  { %v1049_v62 = vmul.f32 %v1550_v61, %v1047_v60  ;;  %vm1054_vm3 = vweird.f32 %v1550_v61 }
0x1549   :  { %vm1055_vm5 = vmor %vm1053_vm4, %vm1054_vm3 }
0x154a   :  { %v1050_v0 = vsub.f32 1.0, %v1049_v62 }
0x154c   :  { %v1051_v1 = vmul.f32 %v1550_v61, %v1050_v0 }
0x154e   :  { %v1052_v3 = vadd.f32 %v1550_v61, %v1051_v1 }
0x1550   :  { %v1056_v5 = vsel %vm1055_vm5, %v1550_v61, %v1052_v3 }
0x1551   :  { %v1061_v9 = vsel %vm1058_vm8, %v1060_v6, %v1056_v5 }
0x1552   :  { %v1067_v14 = vmul.f32 %v1065_v13, %v1061_v9 }
0x1597   :  { %v1070_v8 = vpop.permute.xlu2 %1069 }
0x1598   :  { %v1072_v11 = vmul.f32 %v1070_v8, %v1061_v9 }
0x159a   :  { %1074 = vrot.lane.b32.xlu0 %v1072_v11, %s1669_s3 }
0x160c   :  { %v1075_v16 = vpop.permute.xlu0 %1074 }
0x160d   :  { %v1077_v17 = vadd.f32 %v1075_v16, %v1067_v14 }
0x160f   :  { %1551 = vtanh.f32 %v1077_v17  ;;  %v1136_v33 = vrot.slane %v1077_v17, 6 }
0x1615   :  { %v1552_v19 = vpop.eup %1551 }
0x1616   :  { %1080 = vrot.lane.b32.xlu1 %v1552_v19, %s1668_s16 }
0x1688   :  { %v1081_v20 = vpop.permute.xlu1 %1080 }
0x1689   :  { %v1083_v22 = vmul.f32 %v1081_v20, %v1061_v9 }
0x168b   :  { %1085 = vrot.lane.b32.xlu2 %v1083_v22, %s1669_s3 }
0x16e5   :  { %v1086_v24 = vpop.permute.xlu2 %1085 }
0x16e6   :  { %1088 = vst.msk [vmem:[#allocation2 + $0x8] sm:$0x3] %vm179_vm6, %v1086_v24  ;;  %1429 = vmatmul.msk.f32.vlgmr.msrb.gmra.mxu1 %vm113_vm7, %v1086_v24 }
0x1763   :  { %v1108_v25 = vpop.f32.mrf.mxu1 }
0x1764   :  { %v1112_v63 = vrot.slane %v1108_v25, 6 }
0x1766   :  { %v1114_v26 = vadd.f32 %v1112_v63, %v1949_v55 }
0x1768   :  { %1553 = vtanh.f32 %v1114_v26  ;;  %v1430_v23 = vmul.f32 -1.442695, %v1114_v26 }
0x176a   :  { %1555 = vpow2.f32 %v1430_v23 }
0x176e   :  { %v1554_v30 = vpop.eup %1553 }
0x176f   :  { %1140 = vrot.lane.b32.xlu0 %v1554_v30, %s1668_s16 }
0x1770   :  { %v1556_v32 = vpop.eup %1555 }
0x1771   :  { %v1118_v43 = vadd.f32 1.0, %v1556_v32 }
0x1773   :  { %1557 = vrcp.f32 %v1118_v43  ;;  %v1130_v38 = vand.u32 2147483648, %v1118_v43  ;;  %vm1124_vm9 = vweird.f32 %v1118_v43  ;;  %v1128_v39 = vand.u32 2147483647, %v1118_v43 }
0x1775   :  { %v1131_v29 = vor.u32 1.1754944e-38, %v1130_v38  ;;  %vm1129_vm14 = vcmp.eq.f32.partialorder %v1128_v39, 8.507059e+37 }
0x1779   :  { %v1558_v15 = vpop.eup %1557 }
0x177a   :  { %v1120_v34 = vmul.f32 %v1558_v15, %v1118_v43  ;;  %vm1125_vm6 = vweird.f32 %v1558_v15 }
0x177b   :  { %vm1126_vm13 = vmor %vm1124_vm9, %vm1125_vm6 }
0x177c   :  { %v1121_v35 = vsub.f32 1.0, %v1120_v34 }
0x177e   :  { %v1122_v36 = vmul.f32 %v1558_v15, %v1121_v35 }
0x1780   :  { %v1123_v37 = vadd.f32 %v1558_v15, %v1122_v36 }
0x1782   :  { %v1127_v28 = vsel %vm1126_vm13, %v1558_v15, %v1123_v37 }
0x1783   :  { %v1132_v18 = vsel %vm1129_vm14, %v1131_v29, %v1127_v28 }
0x1784   :  { %v1138_v41 = vmul.f32 %v1136_v33, %v1132_v18 }
0x17e1   :  { %v1141_v31 = vpop.permute.xlu0 %1140 }
0x17e2   :  { %v1143_v40 = vmul.f32 %v1141_v31, %v1132_v18 }
0x17e4   :  { %1145 = vrot.lane.b32.xlu1 %v1143_v40, %s1669_s3 }
0x1856   :  { %v1146_v42 = vpop.permute.xlu1 %1145 }
0x1857   :  { %v1148_v44 = vadd.f32 %v1146_v42, %v1138_v41 }
0x1859   :  { %1559 = vtanh.f32 %v1148_v44  ;;  %v1210_v5 = vrot.slane %v1148_v44, 6  ;;  %v1314_v44 = vld [vmem:[%s2031_s7 + $0x10] sm:$0xff] }
0x185f   :  { %v1560_v45 = vpop.eup %1559 }
0x1860   :  { %1151 = vrot.lane.b32.xlu2 %v1560_v45, %s1668_s16  ;;  %v1313_v45 = vld [vmem:[%s2031_s7 + $0x8] sm:$0xff] }
0x18ba   :  { %v1152_v46 = vpop.permute.xlu2 %1151 }
0x18bb   :  { %v1154_v12 = vmul.f32 %v1152_v46, %v1132_v18  ;;  %v1312_v46 = vld [vmem:[%s2031_s7] sm:$0xff] }
0x18bd   :  { %v1160_v47 = vrot.slane %v1154_v12, 2 }
0x18bf   :  { %1161 = vrot.lane.b32.xlu0 %v1160_v47, %s1669_s3 }
0x1931   :  { %v1162_v48 = vpop.permute.xlu0 %1161 }
0x1932   :  { %1431 = vmatmul.msk.f32.vlgmr.msrb.gmra.mxu2 %vm113_vm7, %v1162_v48 }
0x19b5   :  { %v1182_v49 = vpop.f32.mrf.mxu2 }
0x19b6   :  { %v1186_v50 = vrot.slane %v1182_v49, 4 }
0x19b8   :  { %v1188_v51 = vadd.f32 %v1186_v50, %v1949_v55 }
0x19ba   :  { %1561 = vtanh.f32 %v1188_v51  ;;  %v1432_v53 = vmul.f32 -1.442695, %v1188_v51 }
0x19bc   :  { %1563 = vpow2.f32 %v1432_v53  ;;  %v1448_v53 = vld [vmem:[%s2032_s8] ss:$0 sm:$0xff]  ;;  %s1670_s8 = smov [#allocation8]  }
0x19c0   :  { %v1562_v52 = vpop.eup %1561 }
0x19c1   :  { %1214 = vrot.lane.b32.xlu1 %v1562_v52, %s1668_s16 }
0x19c2   :  { %v1564_v54 = vpop.eup %1563 }
0x19c3   :  { %v1192_v56 = vadd.f32 1.0, %v1564_v54  ;;  %v1349_v54 = vld [vmem:[%s2033_s9] sm:$0xff] }
0x19c5   :  { %1565 = vrcp.f32 %v1192_v56  ;;  %v1204_v61 = vand.u32 2147483648, %v1192_v56  ;;  %vm1198_vm0 = vweird.f32 %v1192_v56  ;;  %v1202_v62 = vand.u32 2147483647, %v1192_v56 }
0x19c7   :  { %v1205_v1 = vor.u32 1.1754944e-38, %v1204_v61  ;;  %vm1203_vm2 = vcmp.eq.f32.partialorder %v1202_v62, 8.507059e+37 }
0x19cb   :  { %v1566_v57 = vpop.eup %1565 }
0x19cc   :  { %v1194_v10 = vmul.f32 %v1566_v57, %v1192_v56  ;;  %vm1199_vm15 = vweird.f32 %v1566_v57 }
0x19cd   :  { %vm1200_vm1 = vmor %vm1198_vm0, %vm1199_vm15 }
0x19ce   :  { %v1195_v58 = vsub.f32 1.0, %v1194_v10 }
0x19d0   :  { %v1196_v59 = vmul.f32 %v1566_v57, %v1195_v58 }
0x19d2   :  { %v1197_v60 = vadd.f32 %v1566_v57, %v1196_v59  ;;  %v1350_v59 = vld [vmem:[%s2033_s9 + $0x8] sm:$0xff]  ;;  %s1384_s9 = sshll.u32 %s1670_s8, 4  ;;  %s1385_s9 = int_to_ptr.vmem [resolvable:$true] %s1384_s9 }
0x19d4   :  { %v1201_v0 = vsel %vm1200_vm1, %v1566_v57, %v1197_v60 }
0x19d5   :  { %v1206_v7 = vsel %vm1203_vm2, %v1205_v1, %v1201_v0 }
0x19d6   :  { %v1212_v6 = vmul.f32 %v1210_v5, %v1206_v7 }
0x1a33   :  { %v1215_v3 = vpop.permute.xlu1 %1214 }
0x1a34   :  { %v1217_v4 = vmul.f32 %v1215_v3, %v1206_v7 }
0x1a36   :  { %1219 = vrot.lane.b32.xlu2 %v1217_v4, %s1669_s3 }
0x1a90   :  { %v1220_v8 = vpop.permute.xlu2 %1219 }
0x1a91   :  { %v1222_v9 = vadd.f32 %v1220_v8, %v1212_v6 }
0x1a93   :  { %1567 = vtanh.f32 %v1222_v9  ;;  %v1284_v29 = vrot.slane %v1222_v9, 6 }
0x1a99   :  { %v1568_v11 = vpop.eup %1567 }
0x1a9a   :  { %1225 = vrot.lane.b32.xlu0 %v1568_v11, %s1668_s16 }
0x1b0c   :  { %v1226_v13 = vpop.permute.xlu0 %1225 }
0x1b0d   :  { %v1228_v14 = vmul.f32 %v1226_v13, %v1206_v7 }
0x1b0f   :  { %v1234_v16 = vrot.slane %v1228_v14, 4 }
0x1b11   :  { %1235 = vrot.lane.b32.xlu1 %v1234_v16, %s1669_s3 }
0x1b83   :  { %v1236_v17 = vpop.permute.xlu1 %1235 }
0x1b84   :  { %1433 = vmatmul.msk.f32.vlgmr.msra.gmra.mxu3 %vm113_vm7, %v1236_v17 }
0x1c07   :  { %v1256_v19 = vpop.f32.mrf.mxu3 }
0x1c08   :  { %v1260_v20 = vrot.slane %v1256_v19, 2 }
0x1c0a   :  { %v1262_v22 = vadd.f32 %v1260_v20, %v1949_v55 }
0x1c0c   :  { %1569 = vtanh.f32 %v1262_v22  ;;  %v1434_v25 = vmul.f32 -1.442695, %v1262_v22 }
0x1c0e   :  { %1571 = vpow2.f32 %v1434_v25 }
0x1c12   :  { %v1570_v24 = vpop.eup %1569 }
0x1c13   :  { %1288 = vrot.lane.b32.xlu2 %v1570_v24, %s1668_s16 }
0x1c14   :  { %v1572_v63 = vpop.eup %1571 }
0x1c15   :  { %v1266_v26 = vadd.f32 1.0, %v1572_v63 }
0x1c17   :  { %1573 = vrcp.f32 %v1266_v26  ;;  %v1278_v55 = vand.u32 2147483648, %v1266_v26  ;;  %vm1272_vm4 = vweird.f32 %v1266_v26  ;;  %v1276_v34 = vand.u32 2147483647, %v1266_v26 }
0x1c19   :  { %v1279_v36 = vor.u32 1.1754944e-38, %v1278_v55  ;;  %vm1277_vm8 = vcmp.eq.f32.partialorder %v1276_v34, 8.507059e+37 }
0x1c1b   :  { %866 = vrot.lane.b32.xlu2 %v1902_v27, %s1669_s3 }
0x1c1d   :  { %v1574_v30 = vpop.eup %1573 }
0x1c1e   :  { %v1268_v23 = vmul.f32 %v1574_v30, %v1266_v26  ;;  %vm1273_vm3 = vweird.f32 %v1574_v30 }
0x1c1f   :  { %vm1274_vm5 = vmor %vm1272_vm4, %vm1273_vm3 }
0x1c20   :  { %v1269_v32 = vsub.f32 1.0, %v1268_v23 }
0x1c22   :  { %v1270_v43 = vmul.f32 %v1574_v30, %v1269_v32 }
0x1c23   :  { %1156 = vrot.lane.b32.xlu2 %v1154_v12, %s1669_s3 }
0x1c24   :  { %v1271_v15 = vadd.f32 %v1574_v30, %v1270_v43 }
0x1c26   :  { %v1275_v35 = vsel %vm1274_vm5, %v1574_v30, %v1271_v15 }
0x1c27   :  { %v1280_v37 = vsel %vm1277_vm8, %v1279_v36, %v1275_v35 }
0x1c28   :  { %v1286_v31 = vmul.f32 %v1284_v29, %v1280_v37 }
0x1c6d   :  { %v1289_v27 = vpop.permute.xlu2 %1288 }
0x1c6e   :  { %v1291_v38 = vmul.f32 %v1289_v27, %v1280_v37 }
0x1c70   :  { %1293 = vrot.lane.b32.xlu0 %v1291_v38, %s1669_s3 }
0x1c75   :  { %v867_v39 = vpop.permute.xlu2 %866 }
0x1c76   :  { %869 = vst.msk [vmem:[#allocation2] sm:$0xc] %vm251_vm10, %v867_v39 }
0x1c78   :  { %940 = vrot.lane.b32.xlu0 %v1921_v2, %s1669_s3  ;;  %v1315_v2 = vld [vmem:[%s2031_s7 + $0x18] sm:$0xff] }
0x1c79   :  { %1338 = vmatpush.msra.mxu0 %v1315_v2 }
0x1c7b   :  { %1339 = vmatpush.msra.mxu0 %v1314_v44 }
0x1c7d   :  { %v1157_v28 = vpop.permute.xlu2 %1156  ;;  %1340 = vmatpush.msra.mxu0 %v1313_v45 }
0x1c7e   :  { %1159 = vst.msk [vmem:[#allocation2 + $0x8] sm:$0xc] %vm251_vm10, %v1157_v28  ;;  %vm1351_vm10 = vcmp.ne.f32.partialorder %v1349_v54, 0.0 }
0x1c7f   :  { %1341 = vmatpush.msra.mxu0 %v1312_v46 }
0x1c80   :  { %1230 = vrot.lane.b32.xlu0 %v1228_v14, %s1669_s3 }
0x1ce2   :  { %v1294_v18 = vpop.permute.xlu0 %1293 }
0x1ce3   :  { %v1296_v40 = vadd.f32 %v1294_v18, %v1286_v31 }
0x1ce5   :  { %1575 = vtanh.f32 %v1296_v40 }
0x1cea   :  { %v941_v33 = vpop.permute.xlu0 %940 }
0x1ceb   :  { %v1576_v41 = vpop.eup %1575  ;;  %943 = vst.msk [vmem:[#allocation2] sm:$0x30] %vm326_vm11, %v941_v33 }
0x1cec   :  { %1299 = vrot.lane.b32.xlu1 %v1576_v41, %s1668_s16 }
0x1cf2   :  { %v1231_v42 = vpop.permute.xlu0 %1230 }
0x1cf3   :  { %1233 = vst.msk [vmem:[#allocation2 + $0x8] sm:$0x30] %vm326_vm11, %v1231_v42  ;;  %vm1355_vm11 = vcmask 64512  }
0x1cf4   :  { %1014 = vrot.lane.b32.xlu1 %v1941_v21, %s1669_s3 }
0x1d5e   :  { %v1300_v21 = vpop.permute.xlu1 %1299 }
0x1d5f   :  { %v1302_v12 = vmul.f32 %v1300_v21, %v1280_v37 }
0x1d61   :  { %1304 = vrot.lane.b32.xlu1 %v1302_v12, %s1669_s3 }
0x1d66   :  { %v1015_v47 = vpop.permute.xlu1 %1014 }
0x1d67   :  { %1017 = vst.msk [vmem:[#allocation2] sm:$0xc0] %vm401_vm12, %v1015_v47 }
0x1d6e   :  { %v1308_v48 = vld [vmem:[#allocation2] sm:$0xff] }
0x1d6f   :  { %v1310_v49 = vmax.f32 %v1308_v48, 0.0 }
0x1d71   :  { %1435 = vmatmul.msk.f32.vlgmr.msra.gmra.mxu0 %vm113_vm7, %v1310_v49 }
0x1dd3   :  { %v1305_v50 = vpop.permute.xlu1 %1304 }
0x1dd4   :  { %1307 = vst.msk [vmem:[#allocation2 + $0x8] sm:$0xc0] %vm401_vm12, %v1305_v50 }
0x1ddb   :  { %v1309_v51 = vld [vmem:[#allocation2 + $0x8] sm:$0xff] }
0x1ddc   :  { %v1311_v52 = vmax.f32 %v1309_v51, 0.0 }
0x1dde   :  { %1436 = vmatmul.msk.f32.gmra.mxu0 %vm113_vm7, %v1311_v52  ;;  %vm1352_vm7 = vcmp.ne.f32.partialorder %v1350_v59, 0.0 }
0x1dee   :  { %v1343_v56 = vpop.f32.mrf.mxu0 }
0x1def   :  { %v1344_v57 = vadd.f32 %v1448_v53, %v1343_v56 }
0x1df1   :  { %v1353_v10 = vsel %vm1351_vm10, %v1344_v57, -1e+30 }
0x1df2   :  { %v1356_v58 = vsel %vm1355_vm11, %v1353_v10, -inf }
0x1df3   :  { %1357 = vmax.xlane.f32.xlu2 %v1356_v58 }
0x1e5b   :  { %v1346_v60 = vpop.f32.mrf.mxu0 }
0x1e5c   :  { %v1347_v61 = vadd.f32 %v1448_v53, %v1346_v60 }
0x1e5e   :  { %v1354_v62 = vsel %vm1352_vm7, %v1347_v61, -1e+30 }
0x1e5f   :  { %v1359_v0 = vsel %vm1355_vm11, %v1354_v62, -inf }
0x1e60   :  { %1360 = vmax.xlane.f32.xlu0 %v1359_v0 }
0x1e66   :  { %v1358_v1 = vpop.xlane.xlu2 %1357 }
0x1e67   :  { %v1362_v3 = vsub.f32 %v1353_v10, %v1358_v1 }
0x1e69   :  { %v1364_v7 = vmul.f32 1.442695, %v1362_v3 }
0x1e6b   :  { %1577 = vpow2.f32 %v1364_v7 }
0x1e71   :  { %v1578_v4 = vpop.eup %1577 }
0x1e72   :  { %v1368_v5 = vsel %vm1355_vm11, %v1578_v4, 0.0 }
0x1e73   :  { %1369 = vadd.xlane.f32.xlu1 %v1368_v5 }
0x1ed3   :  { %v1361_v6 = vpop.xlane.xlu0 %1360 }
0x1ed4   :  { %v1363_v8 = vsub.f32 %v1354_v62, %v1361_v6 }
0x1ed6   :  { %v1366_v9 = vmul.f32 1.442695, %v1363_v8 }
0x1ed8   :  { %1579 = vpow2.f32 %v1366_v9 }
0x1ede   :  { %v1580_v11 = vpop.eup %1579 }
0x1edf   :  { %v1371_v13 = vsel %vm1355_vm11, %v1580_v11, 0.0 }
0x1ee0   :  { %1372 = vadd.xlane.f32.xlu2 %v1371_v13 }
0x1ee6   :  { %v1370_v14 = vpop.xlane.xlu1 %1369 }
0x1ee7   :  { %1581 = vrcp.f32 %v1370_v14 }
0x1eed   :  { %v1582_v16 = vpop.eup %1581 }
0x1eee   :  { %v1376_v17 = vmul.f32 %v1582_v16, %v1578_v4 }
0x1ef0   :  { %1378 = vst.msk [vmem:[#allocation8] sm:$0xff] %vm1355_vm11, %v1376_v17 }
0x1f53   :  { %v1373_v19 = vpop.xlane.xlu2 %1372 }
0x1f54   :  { %1583 = vrcp.f32 %v1373_v19 }
0x1f5a   :  { %v1584_v20 = vpop.eup %1583 }
0x1f5b   :  { %v1377_v22 = vmul.f32 %v1584_v20, %v1580_v11 }
0x1f5d   :  { %1379 = vst.msk [vmem:[#allocation8 + $0x8] sm:$0xff] %vm1355_vm11, %v1377_v22 }
0x1f5e   :  { %1392 = dma.vmem_to_hbm [thread:$0]  %s1385_s9, 256, %s1387_s1, [#allocation5], %s1664_s21, %s1664_s21, %s1665_s22  }
0x1f5f   :  { %1661 = dma.done.wait [#allocation5], 256  }
0x1f60   :  { %1662 = vsyncadd [#allocation5], 4294967040 }
0x1f61   :  { %1397 = vsyncpa [#allocation4], 1 }
0x1f62   :  { %1398 = vsyncpa [#allocation7], 1 }
0x1f63   :  { %1399 = vsyncpa [#allocation5], 1 }

</bundles_post_ra>
